<compile_context>
chip_gen: v7x
topology: tpu7x:2x2x1
jax: 0.10.0
libtpu: 0.0.40
codegen_flags: <defaults>
</compile_context>

<pallas_src>
import functools

import numpy as np
import jax
import jax.numpy as jnp
from jax.experimental import pallas as pl
from jax.experimental.pallas import tpu as pltpu


# ----------------------------------------------------------------------------
# Pallas kernel: attention for BW windows that share one additive bias block.
# ----------------------------------------------------------------------------
def _window_attention_kernel(x_ref, wqkv_ref, bqkv_ref, bias_ref, wp_ref, bp_ref,
                             o_ref, merged_ref, *, num_heads, head_dim):
    bw, N, C = x_ref.shape            # x block: (BW, N, C), f32 (cast below)
    M = bw * N

    # in-kernel f32 -> bf16 cast (no extra HBM pass in the wrapper)
    x2 = x_ref[...].reshape(M, C).astype(jnp.bfloat16)

    # Fused qkv projection (q-scale already folded into weights/bias), f32 accumulate,
    # then immediately narrowed to bf16: every consumer below uses bf16 operands.
    qkv = (jnp.dot(x2, wqkv_ref[...], preferred_element_type=jnp.float32)
           + bqkv_ref[...]).astype(jnp.bfloat16)

    for h in range(num_heads):        # static unroll over heads
        lo = h * head_dim
        q = qkv[:, lo:lo + head_dim].reshape(bw, N, head_dim)
        k = qkv[:, C + lo:C + lo + head_dim].reshape(bw, N, head_dim)
        v = qkv[:, 2 * C + lo:2 * C + lo + head_dim].reshape(bw, N, head_dim)

        # scores for all BW windows of this head (window axis is the batch dim)
        a = jnp.einsum('bqd,bkd->bqk', q, k, preferred_element_type=jnp.float32)
        a = a + bias_ref[h][None]     # relative position bias (+ window mask), f32

        # numerically-stable softmax in f32; reciprocal on the EUP
        a = a - jnp.max(a, axis=-1, keepdims=True)
        a = jnp.exp(a)
        a = a * pl.reciprocal(jnp.sum(a, axis=-1, keepdims=True), approx=True)

        o_h = jnp.einsum('bqk,bkd->bqd', a.astype(jnp.bfloat16), v,
                         preferred_element_type=jnp.float32)
        # write directly into the merged scratch: no concatenate, bounded live range
        merged_ref[:, lo:lo + head_dim] = o_h.reshape(M, head_dim).astype(jnp.bfloat16)

    # output projection (bf16 operands, f32 accumulate)
    y = (jnp.dot(merged_ref[...], wp_ref[...], preferred_element_type=jnp.float32)
         + bp_ref[...])
    o_ref[...] = y.reshape(o_ref.shape).astype(o_ref.dtype)


# ----------------------------------------------------------------------------
# Relative position index (identical to the PyTorch buffer construction)
# ----------------------------------------------------------------------------
def make_relative_position_index(window_size):
    Wh, Ww = window_size
    coords_h = np.arange(Wh)
    coords_w = np.arange(Ww)
    coords = np.stack(np.meshgrid(coords_h, coords_w, indexing="ij"))   # (2, Wh, Ww)
    coords_flatten = coords.reshape(2, -1)                              # (2, N)
    relative_coords = coords_flatten[:, :, None] - coords_flatten[:, None, :]
    relative_coords = relative_coords.transpose(1, 2, 0).copy()         # (N, N, 2)
    relative_coords[:, :, 0] += Wh - 1
    relative_coords[:, :, 1] += Ww - 1
    relative_coords[:, :, 0] *= 2 * Ww - 1
    return relative_coords.sum(-1)                                      # (N, N)


# ----------------------------------------------------------------------------
# One-time parameter preparation (hoisted out of the per-call path):
#   - relative position bias gather / permute, fused with the (static) window mask
#   - weight transposes, q-scale folding, bf16 casts
# ----------------------------------------------------------------------------
def prepare_params(params, window_size, num_heads, qk_scale=None, mask=None):
    dim = params["wp"].shape[0]
    head_dim = dim // num_heads
    scale = qk_scale or head_dim ** (-0.5)
    N = window_size[0] * window_size[1]

    rp_index = jnp.asarray(make_relative_position_index(window_size))
    rel_bias = params["rpb_table"][rp_index.reshape(-1)]
    rel_bias = rel_bias.reshape(N, N, num_heads).transpose(2, 0, 1)      # (H, N, N)
    rel_bias = rel_bias.astype(jnp.float32)

    # fused bias(+mask): shifted-window masks are static per layer -> bake them in once
    if mask is not None:
        bias = rel_bias[None] + mask[:, None].astype(jnp.float32)        # (nW, H, N, N)
    else:
        bias = rel_bias[None]                                            # (1, H, N, N)

    # fold the q scale into the q columns of the qkv weight / bias
    qscale = jnp.concatenate([jnp.full((dim,), scale, jnp.float32),
                              jnp.ones((2 * dim,), jnp.float32)])
    wqkv_t = (params["wqkv"].T.astype(jnp.float32) * qscale[None, :]).astype(jnp.bfloat16)
    bqkv = (params["bqkv"].astype(jnp.float32) * qscale).reshape(1, 3 * dim)
    wp_t = params["wp"].T.astype(jnp.bfloat16)                           # (C, C)
    bp = params["bp"].reshape(1, dim).astype(jnp.float32)

    return {"bias": bias, "wqkv_t": wqkv_t, "bqkv": bqkv, "wp_t": wp_t, "bp": bp}


# ----------------------------------------------------------------------------
# Block-size selection: largest divisor of `batch` with BW*N <= max_rows that also
# fits a conservative per-step VMEM estimate (safe on v7x's 64 MiB VMEM).
# ----------------------------------------------------------------------------
def _vmem_estimate(bw, N, C, num_heads, in_itemsize, out_itemsize):
    M = bw * N
    est = 2 * M * C * in_itemsize          # x block (double-buffered)
    est += 2 * M * C * out_itemsize        # out block (double-buffered)
    est += (C * 3 * C + C * C) * 2         # single-buffered bf16 weights
    est += 2 * num_heads * N * N * 4       # bias(+mask) block (double-buffered)
    est += M * C * 2                       # merged scratch (bf16)
    est += M * 3 * C * (4 + 2)             # qkv dot result (f32) + bf16 copy
    est += M * C * 4                       # y (f32) before store
    est += 2 * bw * N * N * 4              # per-head scores/probs (f32)
    return est


def _pick_block_windows(batch, N, C, num_heads, nW, in_itemsize, out_itemsize,
                        max_rows, vmem_budget):
    def fits(d):
        return (d * N <= max_rows and
                _vmem_estimate(d, N, C, num_heads, in_itemsize, out_itemsize) <= vmem_budget)

    bw = 1                                  # NOTE: prime `batch` falls back to bw=1 (perf cliff only)
    for d in range(1, batch + 1):
        if batch % d == 0 and fits(d):
            bw = d
    # keep the grid at >= 2 steps so both v7x TensorCores get work
    if nW * (batch // bw) < 2 and batch > 1:
        smaller = [d for d in range(1, bw) if batch % d == 0 and fits(d)]
        if smaller:
            bw = max(smaller)
    return bw


# ----------------------------------------------------------------------------
# Wrapper calling pallas_call
# ----------------------------------------------------------------------------
def window_attention(x, prep, window_size, num_heads, *, block_windows=None,
                     max_block_rows=2048, out_dtype=None,
                     vmem_budget_bytes=40 * 1024 * 1024):
    B_, N, C = x.shape
    assert N == window_size[0] * window_size[1]
    head_dim = C // num_heads
    out_dtype = out_dtype or x.dtype        # pass jnp.bfloat16 to halve HBM writeback

    bias = prep["bias"]                     # (nW, H, N, N) f32  (nW=1 when no mask)
    nW = bias.shape[0]
    assert B_ % nW == 0
    batch = B_ // nW

    if block_windows is None:
        bw = _pick_block_windows(batch, N, C, num_heads, nW,
                                 x.dtype.itemsize, jnp.dtype(out_dtype).itemsize,
                                 max_block_rows, vmem_budget_bytes)
    else:
        bw = block_windows
        assert batch % bw == 0

    # (B_, N, C) -> (batch, nW, N, C): mask index is its own (outer) grid axis.
    # No dtype cast here — the kernel casts to bf16 after the DMA.
    x4 = x.reshape(batch, nW, N, C)

    kernel = functools.partial(
        _window_attention_kernel, num_heads=num_heads, head_dim=head_dim)

    const = dict(pipeline_mode=pl.Buffered(1))   # single-buffer constant-index operands

    out = pl.pallas_call(
        kernel,
        out_shape=jax.ShapeDtypeStruct((batch, nW, N, C), out_dtype),
        grid_spec=pltpu.PrefetchScalarGridSpec(
            num_scalar_prefetch=0,
            grid=(nW, batch // bw),              # inner axis varies fastest
            in_specs=[
                pl.BlockSpec((bw, None, N, C), lambda i, j: (j, i, 0, 0)),         # x (f32)
                pl.BlockSpec((C, 3 * C), lambda i, j: (0, 0), **const),            # W_qkv^T (scaled, bf16)
                pl.BlockSpec((1, 3 * C), lambda i, j: (0, 0), **const),            # b_qkv (scaled, f32)
                pl.BlockSpec((None, num_heads, N, N), lambda i, j: (i, 0, 0, 0)),  # bias(+mask): outer axis only
                pl.BlockSpec((C, C), lambda i, j: (0, 0), **const),                # W_proj^T (bf16)
                pl.BlockSpec((1, C), lambda i, j: (0, 0), **const),                # b_proj (f32)
            ],
            out_specs=pl.BlockSpec((bw, None, N, C), lambda i, j: (j, i, 0, 0)),
            scratch_shapes=[pltpu.VMEM((bw * N, C), jnp.bfloat16)],                # merged heads
        ),
        compiler_params=pltpu.CompilerParams(
            dimension_semantics=("parallel", "parallel"),   # megacore-shardable on v7x
            vmem_limit_bytes=48 * 1024 * 1024,              # < v7x's 64 MiB physical; ample on v5e/v6e
        ),
    )(x4, prep["wqkv_t"], prep["bqkv"], bias, prep["wp_t"], prep["bp"])

    return out.reshape(B_, N, C)


# ----------------------------------------------------------------------------
# Pure-JAX reference (mirrors the PyTorch forward exactly; dropout p=0 => identity)
# ----------------------------------------------------------------------------
def window_attention_ref(x, params, window_size, num_heads, mask=None, qk_scale=None):
    B_, N, C = x.shape
    head_dim = C // num_heads
    scale = qk_scale or head_dim ** (-0.5)

    qkv = x @ params["wqkv"].T + params["bqkv"]
    qkv = qkv.reshape(B_, N, 3, num_heads, head_dim).transpose(2, 0, 3, 1, 4)
    q, k, v = qkv[0], qkv[1], qkv[2]
    q = q * scale
    attn = q @ jnp.swapaxes(k, -2, -1)

    rp_index = jnp.asarray(make_relative_position_index(window_size))
    rel_bias = params["rpb_table"][rp_index.reshape(-1)]
    rel_bias = rel_bias.reshape(N, N, num_heads).transpose(2, 0, 1)
    attn = attn + rel_bias[None]

    if mask is not None:
        nW = mask.shape[0]
        attn = attn.reshape(B_ // nW, nW, num_heads, N, N) + mask[None, :, None]
        attn = attn.reshape(-1, num_heads, N, N)
    attn = jax.nn.softmax(attn, axis=-1)

    out = (attn @ v).transpose(0, 2, 1, 3).reshape(B_, N, C)
    out = out @ params["wp"].T + params["bp"]
    return out


# ----------------------------------------------------------------------------
# Deterministic parameter init (synthetic; shapes follow the module __init__)
# ----------------------------------------------------------------------------
def init_params(key, dim, window_size, num_heads):
    Wh, Ww = window_size
    k1, k2, k3, k4, k5 = jax.random.split(key, 5)
    table_len = (2 * Wh - 1) * (2 * Ww - 1)
    return {
        # trunc_normal_(std=0.02)
        "rpb_table": 0.02 * jax.random.truncated_normal(
            k1, -2.0, 2.0, (table_len, num_heads), jnp.float32),
        "wqkv": 0.05 * jax.random.normal(k2, (3 * dim, dim), jnp.float32),
        "bqkv": 0.02 * jax.random.normal(k3, (3 * dim,), jnp.float32),
        "wp": 0.05 * jax.random.normal(k4, (dim, dim), jnp.float32),
        "bp": 0.02 * jax.random.normal(k5, (dim,), jnp.float32),
    }
    # TODO(synk): attn_drop / proj_drop are identity at inference (p=0.0); not implemented.


if __name__ == "__main__":
    dim = 32
    num_heads = 4
    window_size = (4, 4)
    N = window_size[0] * window_size[1]
    batch = 2
    nW = 4
    B_ = batch * nW

    key = jax.random.PRNGKey(0)
    kx, kp, km = jax.random.split(key, 3)
    x = jax.random.normal(kx, (B_, N, dim), jnp.float32)
    params = init_params(kp, dim, window_size, num_heads)

    # no-mask path (bias fused at prepare time)
    prep = prepare_params(params, window_size, num_heads)
    out = window_attention(x, prep, window_size, num_heads)
    out = jax.block_until_ready(out)
    ref = window_attention_ref(x, params, window_size, num_heads, mask=None)
    assert jnp.allclose(out, ref, rtol=3e-2, atol=3e-2), "mismatch (no mask)"

    # masked path (0 / -100 additive mask, as in shifted-window attention)
    mask = jnp.where(jax.random.bernoulli(km, 0.3, (nW, N, N)), -100.0, 0.0).astype(jnp.float32)
    prep_m = prepare_params(params, window_size, num_heads, mask=mask)
    out_m = window_attention(x, prep_m, window_size, num_heads)
    out_m = jax.block_until_ready(out_m)
    ref_m = window_attention_ref(x, params, window_size, num_heads, mask=mask)
    assert jnp.allclose(out_m, ref_m, rtol=3e-2, atol=3e-2), "mismatch (masked)"

    print("KERNEL_OK")
</pallas_src>

<mosaic_0001>
module attributes {stable_mosaic.version = 11 : i64} {
  func.func @_window_attention_kernel(%arg0: i32, %arg1: i32, %arg2: memref<4x1x16x32xf32, #tpu.memory_space<vmem>>, %arg3: memref<32x96xbf16, #tpu.memory_space<vmem>>, %arg4: memref<1x96xf32, #tpu.memory_space<vmem>>, %arg5: memref<1x4x16x16xf32, #tpu.memory_space<vmem>>, %arg6: memref<32x32xbf16, #tpu.memory_space<vmem>>, %arg7: memref<1x32xf32, #tpu.memory_space<vmem>>, %arg8: memref<4x1x16x32xf32, #tpu.memory_space<vmem>>, %arg9: memref<64x32xbf16, #tpu.memory_space<vmem>>) attributes {dimension_semantics = [#tpu.dimension_semantics<parallel>, #tpu.dimension_semantics<parallel>], iteration_bounds = array<i64: 1, 2>, scalar_prefetch = 0 : i64, scratch_operands = 1 : i64, tpu.core_type = #tpu.core_type<tc>, window_params = [{transform_indices = @transform_0, window_bounds = array<i64: 4, 1, 16, 32>}, {pipeline_mode = #tpu.pipeline_mode<synchronous>, transform_indices = @transform_1, window_bounds = array<i64: 32, 96>}, {pipeline_mode = #tpu.pipeline_mode<synchronous>, transform_indices = @transform_2, window_bounds = array<i64: 1, 96>}, {transform_indices = @transform_3, window_bounds = array<i64: 1, 4, 16, 16>}, {pipeline_mode = #tpu.pipeline_mode<synchronous>, transform_indices = @transform_4, window_bounds = array<i64: 32, 32>}, {pipeline_mode = #tpu.pipeline_mode<synchronous>, transform_indices = @transform_5, window_bounds = array<i64: 1, 32>}, {transform_indices = @transform_6, window_bounds = array<i64: 4, 1, 16, 32>}]} {
    %c0 = arith.constant 0 : index
    %c0_0 = arith.constant 0 : index
    %c0_1 = arith.constant 0 : index
    %c0_2 = arith.constant 0 : index
    %0 = vector.load %arg2[%c0, %c0_0, %c0_1, %c0_2] : memref<4x1x16x32xf32, #tpu.memory_space<vmem>>, vector<4x1x16x32xf32>
    %1 = vector.shape_cast %0 : vector<4x1x16x32xf32> to vector<4x16x32xf32>
    %2 = vector.shape_cast %1 : vector<4x16x32xf32> to vector<64x32xf32>
    %3 = arith.truncf %2 : vector<64x32xf32> to vector<64x32xbf16>
    %c0_3 = arith.constant 0 : index
    %c0_4 = arith.constant 0 : index
    %4 = vector.load %arg3[%c0_3, %c0_4] : memref<32x96xbf16, #tpu.memory_space<vmem>>, vector<32x96xbf16>
    %cst = arith.constant dense<0.000000e+00> : vector<64x96xf32>
    %5 = tpu.matmul %3, %4, %cst {dimension_numbers = #tpu.dot_dimension_numbers<[1], [0], [0], [1], [0, 0, 1, 1], [], []>} : vector<64x32xbf16>, vector<32x96xbf16>, vector<64x96xf32> -> vector<64x96xf32>
    %c0_5 = arith.constant 0 : index
    %c0_6 = arith.constant 0 : index
    %6 = vector.load %arg4[%c0_5, %c0_6] : memref<1x96xf32, #tpu.memory_space<vmem>>, vector<1x96xf32>
    %7 = vector.broadcast %6 : vector<1x96xf32> to vector<64x96xf32>
    %8 = arith.addf %5, %7 : vector<64x96xf32>
    %9 = arith.truncf %8 : vector<64x96xf32> to vector<64x96xbf16>
    %10 = vector.extract_strided_slice %9 {offsets = [0, 0], sizes = [64, 8], strides = [1, 1]} : vector<64x96xbf16> to vector<64x8xbf16>
    %11 = vector.shape_cast %10 : vector<64x8xbf16> to vector<4x16x8xbf16>
    %12 = vector.extract_strided_slice %9 {offsets = [0, 32], sizes = [64, 8], strides = [1, 1]} : vector<64x96xbf16> to vector<64x8xbf16>
    %13 = vector.shape_cast %12 : vector<64x8xbf16> to vector<4x16x8xbf16>
    %14 = vector.extract_strided_slice %9 {offsets = [0, 64], sizes = [64, 8], strides = [1, 1]} : vector<64x96xbf16> to vector<64x8xbf16>
    %15 = vector.shape_cast %14 : vector<64x8xbf16> to vector<4x16x8xbf16>
    "tpu.trace_start"() <{level = 10 : i32, message = "bqd,bkd->bqk"}> : () -> ()
    %cst_7 = arith.constant dense<0.000000e+00> : vector<4x16x16xf32>
    %16 = tpu.matmul %11, %13, %cst_7 {dimension_numbers = #tpu.dot_dimension_numbers<[2], [2], [1], [1], [0, 0, 0, 1, 1, 1], [0], [0]>} : vector<4x16x8xbf16>, vector<4x16x8xbf16>, vector<4x16x16xf32> -> vector<4x16x16xf32>
    "tpu.trace_stop"() : () -> ()
    %c0_8 = arith.constant 0 : index
    %c0_9 = arith.constant 0 : index
    %c0_10 = arith.constant 0 : index
    %c0_11 = arith.constant 0 : index
    %17 = vector.load %arg5[%c0_8, %c0_9, %c0_10, %c0_11] : memref<1x4x16x16xf32, #tpu.memory_space<vmem>>, vector<1x1x16x16xf32>
    %18 = vector.shape_cast %17 : vector<1x1x16x16xf32> to vector<16x16xf32>
    %19 = vector.shape_cast %18 : vector<16x16xf32> to vector<1x16x16xf32>
    %20 = vector.broadcast %19 : vector<1x16x16xf32> to vector<4x16x16xf32>
    %21 = arith.addf %16, %20 : vector<4x16x16xf32>
    %cst_12 = arith.constant dense<0xFF800000> : vector<4x16xf32>
    %22 = vector.multi_reduction <maximumf>, %21, %cst_12 [2] : vector<4x16x16xf32> to vector<4x16xf32>
    %23 = vector.shape_cast %22 : vector<4x16xf32> to vector<4x16x1xf32>
    %24 = vector.broadcast %23 : vector<4x16x1xf32> to vector<4x16x16xf32>
    %25 = arith.subf %21, %24 : vector<4x16x16xf32>
    %26 = math.exp %25 : vector<4x16x16xf32>
    %cst_13 = arith.constant dense<0.000000e+00> : vector<4x16xf32>
    %27 = vector.multi_reduction <add>, %26, %cst_13 [2] : vector<4x16x16xf32> to vector<4x16xf32>
    %28 = vector.shape_cast %27 : vector<4x16xf32> to vector<4x16x1xf32>
    %29 = tpu.reciprocal %28 {approx = true} : vector<4x16x1xf32> -> vector<4x16x1xf32>
    %30 = vector.broadcast %29 : vector<4x16x1xf32> to vector<4x16x16xf32>
    %31 = arith.mulf %26, %30 : vector<4x16x16xf32>
    %32 = arith.truncf %31 : vector<4x16x16xf32> to vector<4x16x16xbf16>
    "tpu.trace_start"() <{level = 10 : i32, message = "bqk,bkd->bqd"}> : () -> ()
    %cst_14 = arith.constant dense<0.000000e+00> : vector<4x16x8xf32>
    %33 = tpu.matmul %32, %15, %cst_14 {dimension_numbers = #tpu.dot_dimension_numbers<[2], [1], [1], [2], [0, 0, 0, 1, 1, 2], [0], [0]>} : vector<4x16x16xbf16>, vector<4x16x8xbf16>, vector<4x16x8xf32> -> vector<4x16x8xf32>
    "tpu.trace_stop"() : () -> ()
    %34 = vector.shape_cast %33 : vector<4x16x8xf32> to vector<64x8xf32>
    %35 = arith.truncf %34 : vector<64x8xf32> to vector<64x8xbf16>
    %c0_15 = arith.constant 0 : index
    %c0_16 = arith.constant 0 : index
    %36 = vector.load %arg9[%c0_15, %c0_16] : memref<64x32xbf16, #tpu.memory_space<vmem>>, vector<64x8xbf16>
    tpu.vector_store %arg9[%c0_15, %c0_16], %35 {strides = array<i32>} : memref<64x32xbf16, #tpu.memory_space<vmem>>, vector<64x8xbf16>,
    %37 = vector.extract_strided_slice %9 {offsets = [0, 8], sizes = [64, 8], strides = [1, 1]} : vector<64x96xbf16> to vector<64x8xbf16>
    %38 = vector.shape_cast %37 : vector<64x8xbf16> to vector<4x16x8xbf16>
    %39 = vector.extract_strided_slice %9 {offsets = [0, 40], sizes = [64, 8], strides = [1, 1]} : vector<64x96xbf16> to vector<64x8xbf16>
    %40 = vector.shape_cast %39 : vector<64x8xbf16> to vector<4x16x8xbf16>
    %41 = vector.extract_strided_slice %9 {offsets = [0, 72], sizes = [64, 8], strides = [1, 1]} : vector<64x96xbf16> to vector<64x8xbf16>
    %42 = vector.shape_cast %41 : vector<64x8xbf16> to vector<4x16x8xbf16>
    "tpu.trace_start"() <{level = 10 : i32, message = "bqd,bkd->bqk"}> : () -> ()
    %cst_17 = arith.constant dense<0.000000e+00> : vector<4x16x16xf32>
    %43 = tpu.matmul %38, %40, %cst_17 {dimension_numbers = #tpu.dot_dimension_numbers<[2], [2], [1], [1], [0, 0, 0, 1, 1, 1], [0], [0]>} : vector<4x16x8xbf16>, vector<4x16x8xbf16>, vector<4x16x16xf32> -> vector<4x16x16xf32>
    "tpu.trace_stop"() : () -> ()
    %c0_18 = arith.constant 0 : index
    %c1 = arith.constant 1 : index
    %c0_19 = arith.constant 0 : index
    %c0_20 = arith.constant 0 : index
    %44 = vector.load %arg5[%c0_18, %c1, %c0_19, %c0_20] : memref<1x4x16x16xf32, #tpu.memory_space<vmem>>, vector<1x1x16x16xf32>
    %45 = vector.shape_cast %44 : vector<1x1x16x16xf32> to vector<16x16xf32>
    %46 = vector.shape_cast %45 : vector<16x16xf32> to vector<1x16x16xf32>
    %47 = vector.broadcast %46 : vector<1x16x16xf32> to vector<4x16x16xf32>
    %48 = arith.addf %43, %47 : vector<4x16x16xf32>
    %cst_21 = arith.constant dense<0xFF800000> : vector<4x16xf32>
    %49 = vector.multi_reduction <maximumf>, %48, %cst_21 [2] : vector<4x16x16xf32> to vector<4x16xf32>
    %50 = vector.shape_cast %49 : vector<4x16xf32> to vector<4x16x1xf32>
    %51 = vector.broadcast %50 : vector<4x16x1xf32> to vector<4x16x16xf32>
    %52 = arith.subf %48, %51 : vector<4x16x16xf32>
    %53 = math.exp %52 : vector<4x16x16xf32>
    %cst_22 = arith.constant dense<0.000000e+00> : vector<4x16xf32>
    %54 = vector.multi_reduction <add>, %53, %cst_22 [2] : vector<4x16x16xf32> to vector<4x16xf32>
    %55 = vector.shape_cast %54 : vector<4x16xf32> to vector<4x16x1xf32>
    %56 = tpu.reciprocal %55 {approx = true} : vector<4x16x1xf32> -> vector<4x16x1xf32>
    %57 = vector.broadcast %56 : vector<4x16x1xf32> to vector<4x16x16xf32>
    %58 = arith.mulf %53, %57 : vector<4x16x16xf32>
    %59 = arith.truncf %58 : vector<4x16x16xf32> to vector<4x16x16xbf16>
    "tpu.trace_start"() <{level = 10 : i32, message = "bqk,bkd->bqd"}> : () -> ()
    %cst_23 = arith.constant dense<0.000000e+00> : vector<4x16x8xf32>
    %60 = tpu.matmul %59, %42, %cst_23 {dimension_numbers = #tpu.dot_dimension_numbers<[2], [1], [1], [2], [0, 0, 0, 1, 1, 2], [0], [0]>} : vector<4x16x16xbf16>, vector<4x16x8xbf16>, vector<4x16x8xf32> -> vector<4x16x8xf32>
    "tpu.trace_stop"() : () -> ()
    %61 = vector.shape_cast %60 : vector<4x16x8xf32> to vector<64x8xf32>
    %62 = arith.truncf %61 : vector<64x8xf32> to vector<64x8xbf16>
    %c0_24 = arith.constant 0 : index
    %c8 = arith.constant 8 : index
    %63 = vector.load %arg9[%c0_24, %c8] : memref<64x32xbf16, #tpu.memory_space<vmem>>, vector<64x8xbf16>
    tpu.vector_store %arg9[%c0_24, %c8], %62 {strides = array<i32>} : memref<64x32xbf16, #tpu.memory_space<vmem>>, vector<64x8xbf16>,
    %64 = vector.extract_strided_slice %9 {offsets = [0, 16], sizes = [64, 8], strides = [1, 1]} : vector<64x96xbf16> to vector<64x8xbf16>
    %65 = vector.shape_cast %64 : vector<64x8xbf16> to vector<4x16x8xbf16>
    %66 = vector.extract_strided_slice %9 {offsets = [0, 48], sizes = [64, 8], strides = [1, 1]} : vector<64x96xbf16> to vector<64x8xbf16>
    %67 = vector.shape_cast %66 : vector<64x8xbf16> to vector<4x16x8xbf16>
    %68 = vector.extract_strided_slice %9 {offsets = [0, 80], sizes = [64, 8], strides = [1, 1]} : vector<64x96xbf16> to vector<64x8xbf16>
    %69 = vector.shape_cast %68 : vector<64x8xbf16> to vector<4x16x8xbf16>
    "tpu.trace_start"() <{level = 10 : i32, message = "bqd,bkd->bqk"}> : () -> ()
    %cst_25 = arith.constant dense<0.000000e+00> : vector<4x16x16xf32>
    %70 = tpu.matmul %65, %67, %cst_25 {dimension_numbers = #tpu.dot_dimension_numbers<[2], [2], [1], [1], [0, 0, 0, 1, 1, 1], [0], [0]>} : vector<4x16x8xbf16>, vector<4x16x8xbf16>, vector<4x16x16xf32> -> vector<4x16x16xf32>
    "tpu.trace_stop"() : () -> ()
    %c0_26 = arith.constant 0 : index
    %c2 = arith.constant 2 : index
    %c0_27 = arith.constant 0 : index
    %c0_28 = arith.constant 0 : index
    %71 = vector.load %arg5[%c0_26, %c2, %c0_27, %c0_28] : memref<1x4x16x16xf32, #tpu.memory_space<vmem>>, vector<1x1x16x16xf32>
    %72 = vector.shape_cast %71 : vector<1x1x16x16xf32> to vector<16x16xf32>
    %73 = vector.shape_cast %72 : vector<16x16xf32> to vector<1x16x16xf32>
    %74 = vector.broadcast %73 : vector<1x16x16xf32> to vector<4x16x16xf32>
    %75 = arith.addf %70, %74 : vector<4x16x16xf32>
    %cst_29 = arith.constant dense<0xFF800000> : vector<4x16xf32>
    %76 = vector.multi_reduction <maximumf>, %75, %cst_29 [2] : vector<4x16x16xf32> to vector<4x16xf32>
    %77 = vector.shape_cast %76 : vector<4x16xf32> to vector<4x16x1xf32>
    %78 = vector.broadcast %77 : vector<4x16x1xf32> to vector<4x16x16xf32>
    %79 = arith.subf %75, %78 : vector<4x16x16xf32>
    %80 = math.exp %79 : vector<4x16x16xf32>
    %cst_30 = arith.constant dense<0.000000e+00> : vector<4x16xf32>
    %81 = vector.multi_reduction <add>, %80, %cst_30 [2] : vector<4x16x16xf32> to vector<4x16xf32>
    %82 = vector.shape_cast %81 : vector<4x16xf32> to vector<4x16x1xf32>
    %83 = tpu.reciprocal %82 {approx = true} : vector<4x16x1xf32> -> vector<4x16x1xf32>
    %84 = vector.broadcast %83 : vector<4x16x1xf32> to vector<4x16x16xf32>
    %85 = arith.mulf %80, %84 : vector<4x16x16xf32>
    %86 = arith.truncf %85 : vector<4x16x16xf32> to vector<4x16x16xbf16>
    "tpu.trace_start"() <{level = 10 : i32, message = "bqk,bkd->bqd"}> : () -> ()
    %cst_31 = arith.constant dense<0.000000e+00> : vector<4x16x8xf32>
    %87 = tpu.matmul %86, %69, %cst_31 {dimension_numbers = #tpu.dot_dimension_numbers<[2], [1], [1], [2], [0, 0, 0, 1, 1, 2], [0], [0]>} : vector<4x16x16xbf16>, vector<4x16x8xbf16>, vector<4x16x8xf32> -> vector<4x16x8xf32>
    "tpu.trace_stop"() : () -> ()
    %88 = vector.shape_cast %87 : vector<4x16x8xf32> to vector<64x8xf32>
    %89 = arith.truncf %88 : vector<64x8xf32> to vector<64x8xbf16>
    %c0_32 = arith.constant 0 : index
    %c16 = arith.constant 16 : index
    %90 = vector.load %arg9[%c0_32, %c16] : memref<64x32xbf16, #tpu.memory_space<vmem>>, vector<64x8xbf16>
    tpu.vector_store %arg9[%c0_32, %c16], %89 {strides = array<i32>} : memref<64x32xbf16, #tpu.memory_space<vmem>>, vector<64x8xbf16>,
    %91 = vector.extract_strided_slice %9 {offsets = [0, 24], sizes = [64, 8], strides = [1, 1]} : vector<64x96xbf16> to vector<64x8xbf16>
    %92 = vector.shape_cast %91 : vector<64x8xbf16> to vector<4x16x8xbf16>
    %93 = vector.extract_strided_slice %9 {offsets = [0, 56], sizes = [64, 8], strides = [1, 1]} : vector<64x96xbf16> to vector<64x8xbf16>
    %94 = vector.shape_cast %93 : vector<64x8xbf16> to vector<4x16x8xbf16>
    %95 = vector.extract_strided_slice %9 {offsets = [0, 88], sizes = [64, 8], strides = [1, 1]} : vector<64x96xbf16> to vector<64x8xbf16>
    %96 = vector.shape_cast %95 : vector<64x8xbf16> to vector<4x16x8xbf16>
    "tpu.trace_start"() <{level = 10 : i32, message = "bqd,bkd->bqk"}> : () -> ()
    %cst_33 = arith.constant dense<0.000000e+00> : vector<4x16x16xf32>
    %97 = tpu.matmul %92, %94, %cst_33 {dimension_numbers = #tpu.dot_dimension_numbers<[2], [2], [1], [1], [0, 0, 0, 1, 1, 1], [0], [0]>} : vector<4x16x8xbf16>, vector<4x16x8xbf16>, vector<4x16x16xf32> -> vector<4x16x16xf32>
    "tpu.trace_stop"() : () -> ()
    %c0_34 = arith.constant 0 : index
    %c3 = arith.constant 3 : index
    %c0_35 = arith.constant 0 : index
    %c0_36 = arith.constant 0 : index
    %98 = vector.load %arg5[%c0_34, %c3, %c0_35, %c0_36] : memref<1x4x16x16xf32, #tpu.memory_space<vmem>>, vector<1x1x16x16xf32>
    %99 = vector.shape_cast %98 : vector<1x1x16x16xf32> to vector<16x16xf32>
    %100 = vector.shape_cast %99 : vector<16x16xf32> to vector<1x16x16xf32>
    %101 = vector.broadcast %100 : vector<1x16x16xf32> to vector<4x16x16xf32>
    %102 = arith.addf %97, %101 : vector<4x16x16xf32>
    %cst_37 = arith.constant dense<0xFF800000> : vector<4x16xf32>
    %103 = vector.multi_reduction <maximumf>, %102, %cst_37 [2] : vector<4x16x16xf32> to vector<4x16xf32>
    %104 = vector.shape_cast %103 : vector<4x16xf32> to vector<4x16x1xf32>
    %105 = vector.broadcast %104 : vector<4x16x1xf32> to vector<4x16x16xf32>
    %106 = arith.subf %102, %105 : vector<4x16x16xf32>
    %107 = math.exp %106 : vector<4x16x16xf32>
    %cst_38 = arith.constant dense<0.000000e+00> : vector<4x16xf32>
    %108 = vector.multi_reduction <add>, %107, %cst_38 [2] : vector<4x16x16xf32> to vector<4x16xf32>
    %109 = vector.shape_cast %108 : vector<4x16xf32> to vector<4x16x1xf32>
    %110 = tpu.reciprocal %109 {approx = true} : vector<4x16x1xf32> -> vector<4x16x1xf32>
    %111 = vector.broadcast %110 : vector<4x16x1xf32> to vector<4x16x16xf32>
    %112 = arith.mulf %107, %111 : vector<4x16x16xf32>
    %113 = arith.truncf %112 : vector<4x16x16xf32> to vector<4x16x16xbf16>
    "tpu.trace_start"() <{level = 10 : i32, message = "bqk,bkd->bqd"}> : () -> ()
    %cst_39 = arith.constant dense<0.000000e+00> : vector<4x16x8xf32>
    %114 = tpu.matmul %113, %96, %cst_39 {dimension_numbers = #tpu.dot_dimension_numbers<[2], [1], [1], [2], [0, 0, 0, 1, 1, 2], [0], [0]>} : vector<4x16x16xbf16>, vector<4x16x8xbf16>, vector<4x16x8xf32> -> vector<4x16x8xf32>
    "tpu.trace_stop"() : () -> ()
    %115 = vector.shape_cast %114 : vector<4x16x8xf32> to vector<64x8xf32>
    %116 = arith.truncf %115 : vector<64x8xf32> to vector<64x8xbf16>
    %c0_40 = arith.constant 0 : index
    %c24 = arith.constant 24 : index
    %117 = vector.load %arg9[%c0_40, %c24] : memref<64x32xbf16, #tpu.memory_space<vmem>>, vector<64x8xbf16>
    tpu.vector_store %arg9[%c0_40, %c24], %116 {strides = array<i32>} : memref<64x32xbf16, #tpu.memory_space<vmem>>, vector<64x8xbf16>,
    %c0_41 = arith.constant 0 : index
    %c0_42 = arith.constant 0 : index
    %118 = vector.load %arg9[%c0_41, %c0_42] : memref<64x32xbf16, #tpu.memory_space<vmem>>, vector<64x32xbf16>
    %c0_43 = arith.constant 0 : index
    %c0_44 = arith.constant 0 : index
    %119 = vector.load %arg6[%c0_43, %c0_44] : memref<32x32xbf16, #tpu.memory_space<vmem>>, vector<32x32xbf16>
    %cst_45 = arith.constant dense<0.000000e+00> : vector<64x32xf32>
    %120 = tpu.matmul %118, %119, %cst_45 {dimension_numbers = #tpu.dot_dimension_numbers<[1], [0], [0], [1], [0, 0, 1, 1], [], []>} : vector<64x32xbf16>, vector<32x32xbf16>, vector<64x32xf32> -> vector<64x32xf32>
    %c0_46 = arith.constant 0 : index
    %c0_47 = arith.constant 0 : index
    %121 = vector.load %arg7[%c0_46, %c0_47] : memref<1x32xf32, #tpu.memory_space<vmem>>, vector<1x32xf32>
    %122 = vector.broadcast %121 : vector<1x32xf32> to vector<64x32xf32>
    %123 = arith.addf %120, %122 : vector<64x32xf32>
    %124 = vector.shape_cast %123 : vector<64x32xf32> to vector<4x16x32xf32>
    %c0_48 = arith.constant 0 : index
    %c0_49 = arith.constant 0 : index
    %c0_50 = arith.constant 0 : index
    %c0_51 = arith.constant 0 : index
    %125 = vector.load %arg8[%c0_48, %c0_49, %c0_50, %c0_51] : memref<4x1x16x32xf32, #tpu.memory_space<vmem>>, vector<4x1x16x32xf32>
    %126 = vector.shape_cast %125 : vector<4x1x16x32xf32> to vector<4x16x32xf32>
    %127 = vector.shape_cast %124 : vector<4x16x32xf32> to vector<4x1x16x32xf32>
    tpu.vector_store %arg8[%c0_48, %c0_49, %c0_50, %c0_51], %127 {strides = array<i32>} : memref<4x1x16x32xf32, #tpu.memory_space<vmem>>, vector<4x1x16x32xf32>,
    return
  }
  func.func @transform_0(%arg0: i32, %arg1: i32) -> (i32, i32, i32, i32) {
    %c0_i32 = arith.constant 0 : i32
    %c0_i32_0 = arith.constant 0 : i32
    %c0_i32_1 = arith.constant 0 : i32
    return %arg1, %arg0, %c0_i32, %c0_i32_0 : i32, i32, i32, i32
  }
  func.func @transform_1(%arg0: i32, %arg1: i32) -> (i32, i32) {
    %c0_i32 = arith.constant 0 : i32
    %c0_i32_0 = arith.constant 0 : i32
    %c0_i32_1 = arith.constant 0 : i32
    return %c0_i32, %c0_i32_0 : i32, i32
  }
  func.func @transform_2(%arg0: i32, %arg1: i32) -> (i32, i32) {
    %c0_i32 = arith.constant 0 : i32
    %c0_i32_0 = arith.constant 0 : i32
    %c0_i32_1 = arith.constant 0 : i32
    return %c0_i32, %c0_i32_0 : i32, i32
  }
  func.func @transform_3(%arg0: i32, %arg1: i32) -> (i32, i32, i32, i32) {
    %c0_i32 = arith.constant 0 : i32
    %c0_i32_0 = arith.constant 0 : i32
    %c0_i32_1 = arith.constant 0 : i32
    %c0_i32_2 = arith.constant 0 : i32
    return %arg0, %c0_i32, %c0_i32_0, %c0_i32_1 : i32, i32, i32, i32
  }
  func.func @transform_4(%arg0: i32, %arg1: i32) -> (i32, i32) {
    %c0_i32 = arith.constant 0 : i32
    %c0_i32_0 = arith.constant 0 : i32
    %c0_i32_1 = arith.constant 0 : i32
    return %c0_i32, %c0_i32_0 : i32, i32
  }
  func.func @transform_5(%arg0: i32, %arg1: i32) -> (i32, i32) {
    %c0_i32 = arith.constant 0 : i32
    %c0_i32_0 = arith.constant 0 : i32
    %c0_i32_1 = arith.constant 0 : i32
    return %c0_i32, %c0_i32_0 : i32, i32
  }
  func.func @transform_6(%arg0: i32, %arg1: i32) -> (i32, i32, i32, i32) {
    %c0_i32 = arith.constant 0 : i32
    %c0_i32_0 = arith.constant 0 : i32
    %c0_i32_1 = arith.constant 0 : i32
    return %arg1, %arg0, %c0_i32, %c0_i32_0 : i32, i32, i32, i32
  }
}

</mosaic_0001>

<bundles_post_ra>
// kernel: tpu_custom_call.1
= control target key start
LH: loop header
LB: loop body
LE: loop exit
PB: predicated region body
PF: predicated region fallthrough
CT: control target
= control target key end

     0   :  { %s4366_s0 = inlined_call_operand.hbm [shape: f32[8,1,16,32], index: 0, kind: input, shape index: {}]   ;;  %s4367_s1 = inlined_call_operand.hbm [shape: bf16[32,96], index: 1, kind: input, shape index: {}]   ;;  %s4368_s2 = inlined_call_operand.vmem [shape: f32[1,96], index: 2, kind: input, shape index: {}]   ;;  %s4369_s3 = inlined_call_operand.hbm [shape: f32[1,4,16,16], index: 3, kind: input, shape index: {}]   ;;  %s4370_s4 = inlined_call_operand.hbm [shape: bf16[32,32], index: 4, kind: input, shape index: {}]   ;;  %s4371_s5 = inlined_call_operand.vmem [shape: f32[1,32], index: 5, kind: input, shape index: {}]   ;;  %s4372_s6 = inlined_call_operand.hbm [shape: f32[8,1,16,32], index: 6, kind: output, shape index: {}]  }
   0x1   :  { %4381 = sst [smem:[#allocation18_spill]] %s4367_s1 }
   0x2   :  { %11 = vsyncpa [#allocation4], 0 }
   0x3   :  { %13 = vsyncpa [#allocation4 + $0x1], 0 }
   0x4   :  { %14 = vsyncpa [#allocation7], 0 }
   0x5   :  { %15 = vsyncpa [#allocation10], 0 }
   0x6   :  { %16 = vsyncpa [#allocation5], 0 }
   0x7   :  { %18 = vsyncpa [#allocation5 + $0x1], 0  ;;  %s3618_s21 = smov 0   ;;  %s3620_s22 = smov 0  }
   0x8   :  { %s3622_s23 = smov 0   ;;  %s3624_s24 = smov 0  }
   0x9   :  { %s3626_s25 = smov 0   ;;  %s3628_s26 = smov 0  }
   0xa LB: > { %4382 = sst [smem:[#allocation16_spill]] %s3535_s21  ;;  %s2736_s27 = sadd.s32 4294967295, %s3555_s26   ;;  %s3555_s26 = sphi %s3628_s26, %s24_s26   ;;  %s3551_s25 = sphi %s3626_s25, %s4409_s25   ;;  %s3547_s24 = sphi %s3624_s24, %s4408_s24   ;;  %s3543_s23 = sphi %s3622_s23, %s4407_s23   ;;  %s3539_s22 = sphi %s3620_s22, %s4406_s22   ;;  %s3535_s21 = sphi %s3618_s21, %s4405_s21  }
   0xb   : > { %s2737_s28 = sadd.s32 4294967294, %s3555_s26   ;;  %p58_p0 = scmp.ne.s32.totalorder %s3539_s22, %s3535_s21 }
   0xc   : > { %p3652_p1 = scmp.eq.s32.totalorder %s2736_s27, 0  ;;  %p3656_p2 = scmp.eq.s32.totalorder %s2736_s27, 1 }
   0xd   : > { %p200_p3 = scmp.eq.s32.totalorder %s2737_s28, 1  ;;  %p2738_p5 = scmp.ge.s32.totalorder %s3555_s26, 1 }
   0xe   : > { %s4383_s29 = scalar_select %p3652_p1, 1, 0 }
   0xf   : > { %s4384_s30 = scalar_select %p3656_p2, 1, 0 }
  0x10   : > { %p3662_p4 = por %p3652_p1, %p58_p0  ;;  %p3667_p6 = por %p200_p3, %p58_p0 }
  0x11   : > { %p207_p7 = scmp.lt.s32.totalorder %s3555_s26, 3  ;;  %s3557_s10 = smov [#allocation6]  }
  0x12   : > { %s4385_s7 = scalar_select %p3662_p4, 1, 0 }
  0x13   : > { %s4386_s8 = scalar_select %p3667_p6, 1, 0 }
  0x14   : > { %p3672_p8 = pnand %p2738_p5, %p207_p7  ;;  %s219_s11 = sshll.u32 %s3557_s10, 4  ;;  %s3676_s11 = int_to_ptr.vmem [resolvable:$true] %s219_s11 }
  0x15   : > { %4387 = sst [smem:[#allocation17_spill]] %s4386_s8  ;;  %s3558_s13 = smov [#allocation8]  }
  0x16   : > { %s4388_s9 = scalar_select %p3672_p8, 1, 0 }
  0x17   : > { %p3121_p9 = pneg %p3672_p8  ;;  %s238_s14 = sshll.u32 %s3558_s13, 4  ;;  %s3687_s14 = int_to_ptr.vmem [resolvable:$true] %s238_s14 }
  0x18   : > { %s4390_s1 = sld [smem:[#allocation18_spill]] }
  0x19   : > { %p3683_p11 = pnand %p3121_p9, %p3652_p1 }
  0x1b   : > { %p3697_p13 = pneg %p3683_p11 }
  0x1e   : > { %s3351_s17 = scalar_lea.hbm %s4390_s1, 256 }
  0x1f   : > { %p3352_p12 = scmp.ne.s32.totalorder %s4390_s1, %s3351_s17  ;;  %p3358_p5 = scmp.lt.u32.totalorder %s3351_s17, %s4390_s1 }
  0x21   : > { %p3354_p0 = pnand %p3697_p13, %p3352_p12 }
  0x23   : > { %p3355_p3 = pneg %p3354_p0 }
  0x25   : > { %p3360_p7 = pnand %p3358_p5, %p3355_p3 }
  0x27   : > { %3363 = shalt.err (!%p3360_p7)
}
  0x28   : > { %s3364_s10 = scalar_lea.vmem %s3676_s11, 256  ;;  %p3372_p1 = scmp.lt.s32.totalorder %s3676_s11, %s3676_s11 }
  0x29   : > { %p3365_p9 = scmp.ne.s32.totalorder %s3676_s11, %s3364_s10  ;;  %p3373_p4 = scmp.lt.s32.totalorder %s3364_s10, %s3364_s10 }
  0x2b   : > { %p3367_p10 = pnand %p3365_p9, %p3697_p13  ;;  %p3374_p12 = por %p3373_p4, %p3372_p1 }
  0x2d   : > { %p3368_p6 = pneg %p3367_p10 }
  0x2f   : > { %p3375_p0 = pnand %p3374_p12, %p3368_p6 }
  0x31   : > { %3378 = shalt.err (!%p3375_p0)
}
  0x32   : > { %s4378_s13 = smov 64   ;;  %s4379_s15 = smov 4  }
  0x33   : > { %3124 = dma.hbm_to_vmem [thread:$0]  (!%p3683_p11), %s4390_s1, 256, %s3676_s11, [#allocation7], %s4378_s13, %s4378_s13, %s4379_s15  }
  0x34   : > { %s3379_s27 = scalar_lea.hbm %s4369_s3, 1024 }
  0x35   : > { %p3380_p1 = scmp.ne.s32.totalorder %s4369_s3, %s3379_s27  ;;  %p3386_p10 = scmp.lt.u32.totalorder %s3379_s27, %s4369_s3 }
  0x37   : > { %p3382_p4 = pnand %p3380_p1, %p3697_p13 }
  0x39   : > { %p3383_p6 = pneg %p3382_p4 }
  0x3b   : > { %p3388_p3 = pnand %p3386_p10, %p3383_p6 }
  0x3d   : > { %3391 = shalt.err (!%p3388_p3)
}
  0x3e   : > { %s3392_s11 = scalar_lea.vmem %s3687_s14, 1024  ;;  %p3400_p12 = scmp.lt.s32.totalorder %s3687_s14, %s3687_s14 }
  0x3f   : > { %p3393_p5 = scmp.ne.s32.totalorder %s3687_s14, %s3392_s11  ;;  %p3401_p0 = scmp.lt.s32.totalorder %s3392_s11, %s3392_s11 }
  0x41   : > { %p3395_p7 = pnand %p3393_p5, %p3697_p13  ;;  %p3402_p1 = por %p3401_p0, %p3400_p12 }
  0x43   : > { %p3396_p9 = pneg %p3395_p7 }
  0x45   : > { %p3403_p4 = pnand %p3402_p1, %p3396_p9 }
  0x47   : > { %3406 = shalt.err (!%p3403_p4)
}
  0x48   : > { %s3561_s16 = smov 128   ;;  %s3562_s21 = smov 8  }
  0x49   : > { %3127 = dma.hbm_to_vmem [thread:$0]  (!%p3683_p11), %s4369_s3, 1024, %s3687_s14, [#allocation7], %s3561_s16, %s3561_s16, %s3562_s21  }
  0x4a   : > { %s3563_s18 = smov [#allocation9]   ;;  %s3407_s10 = scalar_lea.hbm %s4370_s4, 256 }
  0x4b   : > { %s251_s19 = sshll.u32 %s3563_s18, 4  ;;  %p3408_p6 = scmp.ne.s32.totalorder %s4370_s4, %s3407_s10  ;;  %s252_s19 = int_to_ptr.vmem [resolvable:$true] %s251_s19 }
  0x4c   : > { %p3414_p5 = scmp.lt.u32.totalorder %s3407_s10, %s4370_s4 }
  0x4d   : > { %p3410_p10 = pnand %p3408_p6, %p3697_p13 }
  0x4f   : > { %p3411_p3 = pneg %p3410_p10 }
  0x51   : > { %p3416_p7 = pnand %p3414_p5, %p3411_p3 }
  0x53   : > { %3419 = shalt.err (!%p3416_p7)
}
  0x54   : > { %s3420_s14 = scalar_lea.vmem %s252_s19, 256  ;;  %p3428_p1 = scmp.lt.s32.totalorder %s252_s19, %s252_s19 }
  0x55   : > { %p3421_p9 = scmp.ne.s32.totalorder %s252_s19, %s3420_s14  ;;  %p3429_p4 = scmp.lt.s32.totalorder %s3420_s14, %s3420_s14 }
  0x57   : > { %p3423_p12 = pnand %p3421_p9, %p3697_p13  ;;  %p3430_p8 = por %p3429_p4, %p3428_p1 }
  0x59   : > { %p3424_p0 = pneg %p3423_p12 }
  0x5b   : > { %p3431_p2 = pnand %p3430_p8, %p3424_p0 }
  0x5d   : > { %3434 = shalt.err (!%p3431_p2)
}
  0x5e   : > { %s4392_s13 = smov 4   ;;  %s4393_s8 = smov 64  }
  0x5f   : > { %3130 = dma.hbm_to_vmem [thread:$0]  (!%p3683_p11), %s4370_s4, 256, %s252_s19, [#allocation10], %s4393_s8, %s4393_s8, %s4392_s13  }
  0x60   : > { %s33_s20 = sadd.s32 1, %s3551_s25  ;;  %s45_s12 = sadd.s32 1, %s3543_s23 }
  0x61   : > { %p34_p2 = scmp.ge.s32.totalorder %s33_s20, 2  ;;  %p52_p8 = scmp.ne.s32.totalorder %s3543_s23, %s3539_s22 }
  0x62   : > { %p53_p13 = scmp.eq.s32.totalorder %s3555_s26, 0  ;;  %p4395_p10 = scmp.ne.s32.totalorder %s4384_s30, 0 }
  0x63   : > { %s4411_s20 = smov (%p34_p2, %s33_s20), 0  ;;  %p3142_p11 = scmp.lt.s32.totalorder %s3555_s26, 2 }
  0x64   : > { %p3775_p6 = por %p53_p13, %p52_p8  ;;  %p3781_p3 = por %p4395_p10, %p52_p8 }
  0x65   : > { %s40_s27 = ssub.s32 %s3551_s25, %s4411_s20  ;;  %s268_s19 = sand.u32 1, %s3543_s23  }
  0x66   : > { %p43_p5 = scmp.eq.s32.totalorder %s40_s27, 0  ;;  %s2743_s28 = sshll.u32 %s268_s19, 6 }
  0x67   : > { %s2806_s11 = sshll.u32 %s3551_s25, 10  ;;  %s272_s30 = scalar_lea.vmem [#allocation3], %s2743_s28 }
  0x68   : > { %s3790_s10 = scalar_select %p43_p5, %s3543_s23, %s45_s12  }
  0x69   : > { %s3796_s8 = scalar_lea.hbm %s4366_s0, %s2806_s11  ;;  %s282_s1 = sshll.u32 %s272_s30, 4  ;;  %s3798_s1 = int_to_ptr.vmem [resolvable:$true] %s282_s1 }
  0x6a   : > { %p3802_p7 = pnand %p3142_p11, %p3775_p6  ;;  %s3806_s12 = scalar_lea.sflag [#allocation4], %s268_s19 }
  0x6b   : > { %s3435_s27 = scalar_lea.hbm %s3796_s8, 1024  ;;  %s3440_s17 = scalar_lea.hbm %s4366_s0, 2048 }
  0x6c   : > { %p3436_p9 = scmp.ne.s32.totalorder %s3796_s8, %s3435_s27  ;;  %p3437_p12 = pneg %p3802_p7 }
  0x6d   : > { %p3441_p4 = scmp.lt.u32.totalorder %s3796_s8, %s4366_s0  ;;  %p3442_p2 = scmp.lt.u32.totalorder %s3440_s17, %s3435_s27 }
  0x6e   : > { %p3438_p0 = pnand %p3437_p12, %p3436_p9  ;;  %p3444_p13 = scmp.lt.u32.totalorder %s3435_s27, %s3796_s8 }
  0x6f   : > { %p3443_p8 = por %p3442_p2, %p3441_p4 }
  0x70   : > { %p3439_p1 = pneg %p3438_p0 }
  0x71   : > { %p3445_p6 = por %p3444_p13, %p3443_p8 }
  0x73   : > { %p3446_p10 = pnand %p3445_p6, %p3439_p1 }
  0x75   : > { %3449 = shalt.err (!%p3446_p10)
}
  0x76   : > { %s3450_s19 = scalar_lea.vmem %s3798_s1, 1024  ;;  %s3564_s30 = smov [#allocation3]  }
  0x77   : > { %p3451_p11 = scmp.ne.s32.totalorder %s3798_s1, %s3450_s19  ;;  %s3455_s28 = sshll.u32 %s3564_s30, 4  ;;  %s3456_s28 = int_to_ptr.vmem [resolvable:$false] %s3455_s28 }
  0x78   : > { %s3457_s11 = scalar_lea.vmem %s3456_s28, 2048  ;;  %p3458_p0 = scmp.lt.s32.totalorder %s3798_s1, %s3456_s28 }
  0x79   : > { %p3453_p5 = pnand %p3451_p11, %p3437_p12  ;;  %p3459_p4 = scmp.lt.s32.totalorder %s3457_s11, %s3450_s19 }
  0x7b   : > { %p3454_p9 = pneg %p3453_p5  ;;  %p3460_p2 = por %p3459_p4, %p3458_p0 }
  0x7d   : > { %p3461_p8 = pnand %p3460_p2, %p3454_p9 }
  0x7f   : > { %3464 = shalt.err (!%p3461_p8)
}
  0x80   : > { %3134 = dma.hbm_to_vmem [thread:$0]  (!%p3802_p7), %s3796_s8, 1024, %s3798_s1, %s3806_s12, %s3561_s16, %s3561_s16, %s3562_s21  }
  0x81   : > { %p4398_p12 = scmp.ne.s32.totalorder %s4388_s9, 0 }
  0x82   : > { %s3840_s27 = sand.u32 (!%p4398_p12), 1, %s3539_s22   ;;  %p4399_p1 = scmp.ne.s32.totalorder (!%p4398_p12), %s4385_s7, 0 }
  0x83   : > { %294 = sbr.rel (%p4398_p12) target bundleno = 3323 (0xcfb), region = 44  ;;  %s2748_s17 = sshll.u32 (!%p4398_p12), %s3840_s27, 6 }
  0x84   : > { %s297_s14 = scalar_lea.sflag (!%p4398_p12), [#allocation4], %s3840_s27  ;;  %s300_s15 = scalar_lea.vmem (!%p4398_p12), [#allocation3], %s2748_s17 }
  0x8a   : > { %3518 = dma.done.wait (%p4399_p1), %s297_s14, 1024  }
  0x8b   : > { %3520 = vsyncadd (%p4399_p1), %s297_s14, 4294966272  ;;  %p4400_p7 = scmp.ne.s32.totalorder %s4383_s29, 0 }
  0x8d   : > { %3522 = dma.done.wait (%p4400_p7), [#allocation7], 1280  }
  0x8e   : > { %3524 = vsyncadd (%p4400_p7), [#allocation7], 4294966016 }
  0x8f   : > { %3526 = dma.done.wait (%p4400_p7), [#allocation10], 256  }
  0x90   : > { %3528 = vsyncadd (%p4400_p7), [#allocation10], 4294967040  ;;  %v3219_v0 = vld [vmem:[#allocation6] sm:$0xff]   ;;  %v3220_v1 = vld [vmem:[#allocation6 + $0x8] sm:$0xff]   ;;  %vm379_vm0 = vcmask 261120   ;;  %v3565_v14 = vmov 0.0  }
  0x91   : > { %2885 = vmatprep.subr.bf16.mxu0 %v3219_v0  ;;  %3101 = vmatprep.subr.bf16.mxu1 %v3219_v0  ;;  %v344_v2 = vld [vmem:[%s300_s15] sm:$0xff]  ;;  %v345_v3 = vld [vmem:[%s300_s15 + $0x8] sm:$0xff]  ;;  %v346_v7 = vld [vmem:[%s300_s15 + $0x10] sm:$0xff]  ;;  %vm3566_vm1 = vmmov 0   ;;  %s3567_s9 = smov 96   ;;  %vm466_vm2 = vcmask 64512  }
  0x92   : > { %v348_v4 = vld [vmem:[%s300_s15 + $0x20] sm:$0xff]  ;;  %2886 = vmatpush3.bf16.msra.mxu0 %v3219_v0  ;;  %3103 = vmatpush3.bf16.msra.mxu1 %v3219_v0  ;;  %v352_v5 = vpack.c.bf16 %v345_v3, %v344_v2  ;;  %v349_v6 = vld [vmem:[%s300_s15 + $0x28] sm:$0xff]  ;;  %v347_v8 = vld [vmem:[%s300_s15 + $0x18] sm:$0xff]  ;;  %vm664_vm3 = vcmask 130048   ;;  %s3568_s16 = smov 64   ;;  %s3569_s21 = smov 88  }
  0x93   : > { %2887 = vmatprep.subr.bf16.mxu0 %v3220_v1  ;;  %3102 = vmatprep.subr.bf16.mxu1 %v3220_v1  ;;  %v354_v9 = vpack.c.bf16 %v349_v6, %v348_v4  ;;  %v350_v10 = vld [vmem:[%s300_s15 + $0x30] sm:$0xff]  ;;  %v351_v11 = vld [vmem:[%s300_s15 + $0x38] sm:$0xff]  ;;  %v353_v12 = vpack.c.bf16 %v347_v8, %v346_v7  ;;  %v2753_v16 = vld [vmem:[%s4368_s2] ss:$0 sm:$0xff]  ;;  %s3570_s8 = smov 120   ;;  %s3571_s1 = smov 56  }
  0x94   : > { %2889 = vmatprep.mubr.msk.bf16.mxu0 %vm379_vm0, %v352_v5  ;;  %v355_v13 = vpack.c.bf16 %v351_v11, %v350_v10  ;;  %v461_v44 = vld [vmem:[#allocation8] sm:$0xff]  ;;  %v462_v47 = vld [vmem:[#allocation8 + $0x8] sm:$0xff]  ;;  %s3572_s12 = smov 80   ;;  %s3573_s13 = smov 112   ;;  %vm1460_vm4 = vcmask 130112   ;;  %vm1972_vm5 = vcmask 195712  }
  0x95   : > { %2893 = vmatprep.mubr.msk.bf16.mxu1 %vm379_vm0, %v354_v9  ;;  %s3574_s19 = smov 48   ;;  %s3575_s30 = smov 72   ;;  %vm2484_vm6 = vcmask 261312  }
  0x96   : > { %2888 = vmatpush3.bf16.msra.mxu0 %v3220_v1  ;;  %3104 = vmatpush3.bf16.msra.mxu1 %v3220_v1  ;;  %s3576_s28 = smov 104   ;;  %s3577_s11 = smov 40  }
  0x97   : > { %2897 = vmatprep.subr.bf16.mxu1 %v3565_v14  ;;  %2909 = vmatprep.subr.bf16.mxu0 %v3565_v14  ;;  %s3578_s14 = smov 8   ;;  %s3579_s15 = smov 16  }
  0x98   : > { %s3580_s29 = smov 24  }
  0x99   : > { %2890 = vmatmul.mubr.msk.bf16.vlgmr.msra.gmra.mrb[0].mxu0 %vm379_vm0, %v353_v12  ;;  %2894 = vmatmul.mubr.msk.bf16.vlgmr.msra.gmra.mrb[0].mxu1 %vm379_vm0, %v355_v13 }
  0x9a   : > { %2899 = vmatprep.mubr.msk.bf16.mxu1 %vm3566_vm1, %v3565_v14  ;;  %2911 = vmatprep.mubr.msk.bf16.mxu0 %vm3566_vm1, %v3565_v14 }
 0x16c   : > { %v2891_v15 = vpop.f32.mrb[0].mxu0  ;;  %v2895_v17 = vpop.f32.mrb[0].mxu1 }
 0x16d   : > { %v451_v18 = vadd.f32 %v2895_v17, %v2753_v16  ;;  %v426_v19 = vpop.f32.mrb[1].mxu0  ;;  %v442_v20 = vpop.f32.mrb[1].mxu1  ;;  %v435_v24 = vadd.f32 %v2891_v15, %v2753_v16 }
 0x16e   : > { %v443_v21 = vadd.f32 %v2753_v16, %v442_v20  ;;  %v2892_v22 = vpop.f32.mrb[2].mxu0  ;;  %v2896_v23 = vpop.f32.mrb[2].mxu1  ;;  %v427_v29 = vadd.f32 %v2753_v16, %v426_v19 }
 0x16f   : > { %v438_v25 = vadd.f32 %v2892_v22, %v2753_v16  ;;  %v454_v26 = vadd.f32 %v2896_v23, %v2753_v16  ;;  %v429_v27 = vpop.f32.mrb[3].mxu0  ;;  %v445_v28 = vpop.f32.mrb[3].mxu1 }
 0x170   : > { %v430_v30 = vadd.f32 %v2753_v16, %v429_v27  ;;  %v446_v31 = vadd.f32 %v2753_v16, %v445_v28 }
 0x171   : > { %v3871_v32 = vpack.c.bf16 %v438_v25, %v435_v24  ;;  %v3873_v33 = vpack.c.bf16 %v454_v26, %v451_v18 }
 0x172   : > { %v3875_v34 = vpack.c.bf16 %v430_v30, %v427_v29  ;;  %v3877_v35 = vpack.c.bf16 %v446_v31, %v443_v21 }
 0x174   : > { %565 = vrot.lane.b32.xlu1 %v3877_v35, %s3567_s9  ;;  %464 = vrot.lane.b32.xlu0 %v3875_v34, %s3567_s9 }
 0x178   : > { %515 = vrot.lane.b32.xlu0 %v3871_v32, %s3567_s9  ;;  %615 = vrot.lane.b32.xlu1 %v3873_v33, %s3567_s9 }
 0x1e6   : > { %v566_v36 = vpop.permute.xlu1 %565  ;;  %v465_v37 = vpop.permute.xlu0 %464 }
 0x1e7   : > { %v571_v38 = vsel %vm466_vm2, %v566_v36, 0  ;;  %v471_v39 = vsel %vm466_vm2, %v465_v37, 0 }
 0x1e8   : > { %2898 = vmatpush3.bf16.xpose.msra.mxu1 %v471_v39  ;;  %2910 = vmatpush3.bf16.xpose.msra.mxu0 %v571_v38 }
 0x1e9   : > { %2903 = vmatprep.subr.bf16.mxu1 %v3565_v14  ;;  %2921 = vmatprep.subr.bf16.mxu0 %v3565_v14 }
 0x1ea   : > { %v516_v40 = vpop.permute.xlu0 %515  ;;  %v616_v42 = vpop.permute.xlu1 %615 }
 0x1eb   : > { %v521_v41 = vsel %vm466_vm2, %v516_v40, 0  ;;  %v621_v43 = vsel %vm466_vm2, %v616_v42, 0 }
 0x1ef   : > { %2900 = vmatmul.mubr.msk.bf16.vlgmr.msra.gmra.mrb[4].mxu1 %vm466_vm2, %v3875_v34  ;;  %2912 = vmatmul.mubr.msk.bf16.vlgmr.msra.gmra.mrb[4].mxu0 %vm466_vm2, %v3877_v35 }
 0x1f0   : > { %2904 = vmatpush3.bf16.xpose.msra.mxu1 %v521_v41  ;;  %2905 = vmatprep.mubr.msk.bf16.mxu1 %vm3566_vm1, %v3565_v14 }
 0x1f1   : > { %2915 = vmatprep.subr.bf16.mxu1 %v3565_v14  ;;  %2923 = vmatprep.mubr.msk.bf16.mxu0 %vm3566_vm1, %v3565_v14 }
 0x1f7   : > { %2906 = vmatmul.mubr.msk.bf16.vlgmr.msra.gmra.mrb[8].mxu1 %vm466_vm2, %v3871_v32 }
 0x1f8   : > { %2916 = vmatpush3.bf16.xpose.msra.mxu1 %v621_v43  ;;  %2917 = vmatprep.mubr.msk.bf16.mxu1 %vm3566_vm1, %v3565_v14 }
 0x1f9   : > { %2927 = vmatprep.subr.bf16.mxu1 %v3565_v14 }
 0x1ff   : > { %2918 = vmatmul.mubr.msk.bf16.vlgmr.msra.gmra.mrb[12].mxu1 %vm466_vm2, %v3873_v33 }
 0x200   : > { %2929 = vmatprep.mubr.msk.bf16.mxu1 %vm3566_vm1, %v3565_v14 }
 0x2c2   : > { %v507_v45 = vpop.f32.mrb[4].mxu1  ;;  %v607_v46 = vpop.f32.mrb[4].mxu0 }
 0x2c3   : > { %v508_v48 = vadd.f32 %v507_v45, %v461_v44  ;;  %v608_v49 = vadd.f32 %v607_v46, %v461_v44  ;;  %v2901_v50 = vpop.f32.mrb[5].mxu1  ;;  %v2913_v51 = vpop.f32.mrb[5].mxu0 }
 0x2c4   : > { %v510_v52 = vpop.f32.mrb[6].mxu1  ;;  %v610_v53 = vpop.f32.mrb[6].mxu0 }
 0x2c5   : > { %v511_v54 = vadd.f32 %v510_v52, %v462_v47  ;;  %v2902_v55 = vpop.f32.mrb[7].mxu1  ;;  %v2914_v56 = vpop.f32.mrb[7].mxu0  ;;  %v677_v57 = vsel %vm664_vm3, %v608_v49, -inf  ;;  %v665_v58 = vsel %vm664_vm3, %v508_v48, -inf  ;;  %v611_v3 = vadd.f32 %v610_v53, %v462_v47 }
 0x2c6   : > { %678 = vmax.xlane.f32.xlu1 %v677_v57  ;;  %666 = vmax.xlane.f32.xlu0 %v665_v58 }
 0x2c7   : > { %v668_v59 = vsel %vm664_vm3, %v511_v54, -inf  ;;  %v680_v11 = vsel %vm664_vm3, %v611_v3, -inf }
 0x2ca   : > { %669 = vmax.xlane.f32.xlu1 %v668_v59  ;;  %v557_v60 = vpop.f32.mrb[8].mxu1 }
 0x2cb   : > { %v558_v61 = vadd.f32 %v557_v60, %v461_v44  ;;  %v2907_v62 = vpop.f32.mrb[9].mxu1 }
 0x2cc   : > { %v560_v63 = vpop.f32.mrb[10].mxu1 }
 0x2cd   : > { %v561_v0 = vadd.f32 %v560_v63, %v462_v47  ;;  %v2908_v1 = vpop.f32.mrb[11].mxu1  ;;  %v671_v2 = vsel %vm664_vm3, %v558_v61, -inf }
 0x2ce   : > { %672 = vmax.xlane.f32.xlu0 %v671_v2 }
 0x2cf   : > { %v674_v4 = vsel %vm664_vm3, %v561_v0, -inf }
 0x2d2   : > { %675 = vmax.xlane.f32.xlu0 %v674_v4  ;;  %v657_v5 = vpop.f32.mrb[12].mxu1 }
 0x2d3   : > { %v3912_v6 = vadd.f32 %v657_v5, %v461_v44  ;;  %v2919_v7 = vpop.f32.mrb[13].mxu1 }
 0x2d4   : > { %v660_v8 = vpop.f32.mrb[14].mxu1 }
 0x2d5   : > { %v3914_v9 = vadd.f32 %v660_v8, %v462_v47  ;;  %v2920_v10 = vpop.f32.mrb[15].mxu1  ;;  %v683_v12 = vsel %vm664_vm3, %v3912_v6, -inf }
 0x2d6   : > { %681 = vmax.xlane.f32.xlu0 %v680_v11  ;;  %684 = vmax.xlane.f32.xlu1 %v683_v12 }
 0x2d7   : > { %v686_v13 = vsel %vm664_vm3, %v3914_v9, -inf }
 0x2da   : > { %687 = vmax.xlane.f32.xlu0 %v686_v13 }
 0x2e7   : > { %757 = vrot.lane.b32.xlu1 %v3875_v34, %s3568_s16 }
 0x353   : > { %v679_v15 = vpop.xlane.xlu1 %678  ;;  %v667_v16 = vpop.xlane.xlu0 %666 }
 0x354   : > { %v693_v17 = vsub.f32 %v608_v49, %v679_v15  ;;  %v689_v18 = vsub.f32 %v508_v48, %v667_v16 }
 0x356   : > { %v697_v19 = vmul.f32 1.442695, %v689_v18  ;;  %v705_v20 = vmul.f32 1.442695, %v693_v17 }
 0x357   : > { %v670_v21 = vpop.xlane.xlu1 %669 }
 0x358   : > { %v690_v22 = vsub.f32 %v511_v54, %v670_v21  ;;  %3223 = vpow2.f32 %v697_v19 }
 0x359   : > { %3225 = vpow2.f32 %v705_v20 }
 0x35a   : > { %v699_v23 = vmul.f32 1.442695, %v690_v22 }
 0x35b   : > { %v673_v24 = vpop.xlane.xlu0 %672 }
 0x35c   : > { %3227 = vpow2.f32 %v699_v23  ;;  %v691_v25 = vsub.f32 %v558_v61, %v673_v24 }
 0x35e   : > { %v701_v26 = vmul.f32 1.442695, %v691_v25 }
 0x35f   : > { %v676_v27 = vpop.xlane.xlu0 %675 }
 0x360   : > { %3229 = vpow2.f32 %v701_v26  ;;  %v692_v29 = vsub.f32 %v561_v0, %v676_v27 }
 0x362   : > { %v3923_v28 = vpop.eup %3223  ;;  %v703_v41 = vmul.f32 1.442695, %v692_v29 }
 0x363   : > { %v685_v30 = vpop.xlane.xlu1 %684  ;;  %v682_v31 = vpop.xlane.xlu0 %681  ;;  %v713_v37 = vsel %vm664_vm3, %v3923_v28, 0.0 }
 0x364   : > { %v694_v36 = vsub.f32 %v611_v3, %v682_v31  ;;  %v3927_v38 = vpop.eup %3225  ;;  %714 = vadd.xlane.f32.xlu1 %v713_v37  ;;  %v695_v51 = vsub.f32 %v3912_v6, %v685_v30 }
 0x365   : > { %v725_v44 = vsel %vm664_vm3, %v3927_v38, 0.0 }
 0x366   : > { %v3228_v39 = vpop.eup %3227  ;;  %v707_v40 = vmul.f32 1.442695, %v694_v36  ;;  %v709_v52 = vmul.f32 1.442695, %v695_v51 }
 0x367   : > { %v758_v42 = vpop.permute.xlu1 %757  ;;  %v716_v43 = vsel %vm664_vm3, %v3228_v39, 0.0  ;;  %v688_v53 = vpop.xlane.xlu0 %687 }
 0x368   : > { %2922 = vmatpush3.bf16.msra.mxu0 %v758_v42  ;;  %717 = vadd.xlane.f32.xlu0 %v716_v43  ;;  %3231 = vpow2.f32 %v707_v40  ;;  %v696_v54 = vsub.f32 %v3914_v9, %v688_v53 }
 0x369   : > { %726 = vadd.xlane.f32.xlu1 %v725_v44  ;;  %2933 = vmatprep.subr.bf16.mxu0 %v3565_v14  ;;  %3233 = vpow2.f32 %v703_v41 }
 0x36a   : > { %v3933_v45 = vpop.eup %3229  ;;  %3235 = vpow2.f32 %v709_v52  ;;  %v711_v55 = vmul.f32 1.442695, %v696_v54 }
 0x36b   : > { %v719_v46 = vsel %vm664_vm3, %v3933_v45, 0.0 }
 0x36c   : > { %3237 = vpow2.f32 %v711_v55 }
 0x36d   : > { %720 = vadd.xlane.f32.xlu1 %v719_v46 }
 0x372   : > { %v3232_v47 = vpop.eup %3231 }
 0x373   : > { %v728_v48 = vsel %vm664_vm3, %v3232_v47, 0.0  ;;  %v3938_v49 = vpop.eup %3233 }
 0x374   : > { %729 = vadd.xlane.f32.xlu0 %v728_v48  ;;  %v722_v50 = vsel %vm664_vm3, %v3938_v49, 0.0  ;;  %v3950_v56 = vpop.eup %3235 }
 0x375   : > { %v731_v57 = vsel %vm664_vm3, %v3950_v56, 0.0 }
 0x376   : > { %v3954_v58 = vpop.eup %3237 }
 0x377   : > { %v734_v59 = vsel %vm664_vm3, %v3954_v58, 0.0 }
 0x378   : > { %723 = vadd.xlane.f32.xlu0 %v722_v50 }
 0x37e   : > { %851 = vrot.lane.b32.xlu1 %v3877_v35, %s3568_s16 }
 0x382   : > { %898 = vrot.lane.b32.xlu1 %v3873_v33, %s3568_s16 }
 0x38e   : > { %804 = vrot.lane.b32.xlu0 %v3871_v32, %s3568_s16  ;;  %s340_s16 = scalar_lea.vmem [#allocation11], %s2748_s17 }
 0x3a6   : > { %732 = vadd.xlane.f32.xlu1 %v731_v57 }
 0x3ad   : > { %735 = vadd.xlane.f32.xlu0 %v734_v59  ;;  %v954_v59 = vld [vmem:[#allocation8 + $0x10] sm:$0xff] }
 0x3b7   : > { %1009 = vrot.lane.b32.xlu1 %v3871_v32, %s3569_s21 }
 0x3bb   : > { %1060 = vrot.lane.b32.xlu1 %v3877_v35, %s3569_s21 }
 0x3bf   : > { %1111 = vrot.lane.b32.xlu1 %v3873_v33, %s3569_s21 }
 0x3c3   : > { %1109 = vrot.lane.b32.xlu1 %v3873_v33, %s3570_s8  ;;  %958 = vrot.lane.b32.xlu0 %v3875_v34, %s3569_s21  ;;  %s2808_s21 = sshll.u32 %s3547_s24, 10  ;;  %s2602_s24 = scalar_lea.sflag [#allocation5], %s3840_s27 }
 0x3c7   : > { %956 = vrot.lane.b32.xlu0 %v3875_v34, %s3570_s8 }
 0x3cb   : > { %1007 = vrot.lane.b32.xlu0 %v3871_v32, %s3570_s8 }
 0x3cf   : > { %1058 = vrot.lane.b32.xlu0 %v3877_v35, %s3570_s8  ;;  %s2618_s8 = sshll.u32 %s340_s16, 4  ;;  %s4314_s8 = int_to_ptr.vmem [resolvable:$true] %s2618_s8 }
 0x3f1   : > { %v715_v60 = vpop.xlane.xlu1 %714 }
 0x3f2   : > { %3239 = vrcp.f32 %v715_v60 }
 0x3f5   : > { %v718_v61 = vpop.xlane.xlu0 %717 }
 0x3f6   : > { %3241 = vrcp.f32 %v718_v61  ;;  %v727_v62 = vpop.xlane.xlu1 %726  ;;  %v955_v61 = vld [vmem:[#allocation8 + $0x18] sm:$0xff] }
 0x3f7   : > { %3243 = vrcp.f32 %v727_v62 }
 0x3fa   : > { %v721_v0 = vpop.xlane.xlu1 %720 }
 0x3fc   : > { %v3240_v63 = vpop.eup %3239 }
 0x3fd   : > { %v745_v2 = vmul.f32 %v3240_v63, %v3923_v28 }
 0x3fe   : > { %v852_v6 = vpop.permute.xlu1 %851 }
 0x400   : > { %v3242_v1 = vpop.eup %3241 }
 0x401   : > { %v746_v3 = vmul.f32 %v3242_v1, %v3228_v39  ;;  %v730_v4 = vpop.xlane.xlu0 %729  ;;  %v3244_v9 = vpop.eup %3243 }
 0x402   : > { %3245 = vrcp.f32 %v730_v4  ;;  %v749_v11 = vmul.f32 %v3244_v9, %v3927_v38  ;;  %v899_v20 = vpop.permute.xlu1 %898 }
 0x403   : > { %v753_v5 = vpack.c.bf16 %v746_v3, %v745_v2  ;;  %3247 = vrcp.f32 %v721_v0 }
 0x405   : > { %2924 = vmatmul.mubr.msk.bf16.vlgmr.msra.gmra.mrb[8].mxu0 %vm664_vm3, %v753_v5  ;;  %v724_v7 = vpop.xlane.xlu0 %723 }
 0x406   : > { %2934 = vmatpush3.bf16.msra.mxu0 %v852_v6  ;;  %2935 = vmatprep.mubr.msk.bf16.mxu0 %vm3566_vm1, %v3565_v14  ;;  %3249 = vrcp.f32 %v724_v7 }
 0x407   : > { %2945 = vmatprep.subr.bf16.mxu0 %v3565_v14 }
 0x409   : > { %v805_v8 = vpop.permute.xlu0 %804 }
 0x40a   : > { %2928 = vmatpush3.bf16.msra.mxu1 %v805_v8 }
 0x40b   : > { %2939 = vmatprep.subr.bf16.mxu1 %v3565_v14 }
 0x40c   : > { %v3246_v10 = vpop.eup %3245 }
 0x40d   : > { %v750_v12 = vmul.f32 %v3246_v10, %v3232_v47  ;;  %v3248_v13 = vpop.eup %3247 }
 0x40e   : > { %v747_v17 = vmul.f32 %v3248_v13, %v3933_v45 }
 0x40f   : > { %v755_v15 = vpack.c.bf16 %v750_v12, %v749_v11 }
 0x410   : > { %v3250_v16 = vpop.eup %3249 }
 0x411   : > { %v748_v18 = vmul.f32 %v3250_v16, %v3938_v49  ;;  %2936 = vmatmul.mubr.msk.bf16.vlgmr.msra.gmra.mrb[12].mxu0 %vm664_vm3, %v755_v15 }
 0x412   : > { %2947 = vmatprep.mubr.msk.bf16.mxu0 %vm3566_vm1, %v3565_v14 }
 0x413   : > { %v754_v19 = vpack.c.bf16 %v748_v18, %v747_v17 }
 0x415   : > { %2930 = vmatmul.mubr.msk.bf16.vlgmr.msra.gmra.mrb[16].mxu1 %vm664_vm3, %v754_v19 }
 0x416   : > { %2940 = vmatpush3.bf16.msra.mxu1 %v899_v20  ;;  %2941 = vmatprep.mubr.msk.bf16.mxu1 %vm3566_vm1, %v3565_v14 }
 0x417   : > { %2951 = vmatprep.subr.bf16.mxu1 %v3565_v14 }
 0x433   : > { %v733_v21 = vpop.xlane.xlu1 %732 }
 0x434   : > { %3251 = vrcp.f32 %v733_v21 }
 0x437   : > { %v1010_v23 = vpop.permute.xlu1 %1009 }
 0x438   : > { %v1015_v39 = vsel %vm466_vm2, %v1010_v23, 0 }
 0x43a   : > { %v736_v22 = vpop.xlane.xlu0 %735 }
 0x43b   : > { %3253 = vrcp.f32 %v736_v22  ;;  %v1061_v28 = vpop.permute.xlu1 %1060 }
 0x43c   : > { %v1066_v36 = vsel %vm466_vm2, %v1061_v28, 0 }
 0x43e   : > { %v959_v24 = vpop.permute.xlu0 %958  ;;  %v3252_v27 = vpop.eup %3251 }
 0x43f   : > { %v964_v25 = vsel %vm466_vm2, %v959_v24, 0  ;;  %v751_v30 = vmul.f32 %v3252_v27, %v3950_v56  ;;  %v1112_v41 = vpop.permute.xlu1 %1111 }
 0x440   : > { %2946 = vmatpush3.bf16.xpose.msra.mxu0 %v964_v25  ;;  %v1117_v42 = vsel %vm466_vm2, %v1112_v41, 0 }
 0x441   : > { %2957 = vmatprep.subr.bf16.mxu0 %v3565_v14 }
 0x442   : > { %v957_v26 = vpop.permute.xlu0 %956 }
 0x443   : > { %v1110_v43 = vpop.permute.xlu1 %1109 }
 0x445   : > { %v3254_v29 = vpop.eup %3253 }
 0x446   : > { %v752_v31 = vmul.f32 %v3254_v29, %v3954_v58  ;;  %v1008_v37 = vpop.permute.xlu0 %1007 }
 0x447   : > { %2948 = vmatmul.mubr.msk.bf16.vlgmr.msra.gmra.mrb[16].mxu0 %vm466_vm2, %v957_v26 }
 0x448   : > { %2958 = vmatpush3.bf16.xpose.msra.mxu0 %v1066_v36  ;;  %v756_v38 = vpack.c.bf16 %v752_v31, %v751_v30  ;;  %2959 = vmatprep.mubr.msk.bf16.mxu0 %vm3566_vm1, %v3565_v14 }
 0x449   : > { %2969 = vmatprep.subr.bf16.mxu0 %v3565_v14 }
 0x44a   : > { %2942 = vmatmul.mubr.msk.bf16.vlgmr.msra.gmra.mrb[20].mxu1 %vm664_vm3, %v756_v38  ;;  %v1059_v40 = vpop.permute.xlu0 %1058 }
 0x44b   : > { %2952 = vmatpush3.bf16.xpose.msra.mxu1 %v1015_v39  ;;  %2953 = vmatprep.mubr.msk.bf16.mxu1 %vm3566_vm1, %v3565_v14 }
 0x44c   : > { %2963 = vmatprep.subr.bf16.mxu1 %v3565_v14 }
 0x44f   : > { %2960 = vmatmul.mubr.msk.bf16.vlgmr.msra.gmra.mrb[20].mxu0 %vm466_vm2, %v1059_v40 }
 0x450   : > { %2971 = vmatprep.mubr.msk.bf16.mxu0 %vm3566_vm1, %v3565_v14 }
 0x452   : > { %2954 = vmatmul.mubr.msk.bf16.vlgmr.msra.gmra.mrb[24].mxu1 %vm466_vm2, %v1008_v37 }
 0x453   : > { %2964 = vmatpush3.bf16.xpose.msra.mxu1 %v1117_v42  ;;  %2965 = vmatprep.mubr.msk.bf16.mxu1 %vm3566_vm1, %v3565_v14 }
 0x454   : > { %2975 = vmatprep.subr.bf16.mxu1 %v3565_v14 }
 0x45a   : > { %2966 = vmatmul.mubr.msk.bf16.vlgmr.msra.gmra.mrb[28].mxu1 %vm466_vm2, %v1110_v43 }
 0x45b   : > { %2977 = vmatprep.mubr.msk.bf16.mxu1 %vm3566_vm1, %v3565_v14 }
 0x4d8   : > { %v797_v44 = vpop.f32.mrb[8].mxu0 }
 0x4d9   : > { %v2925_v45 = vpop.f32.mrb[9].mxu0 }
 0x4da   : > { %v800_v46 = vpop.f32.mrb[10].mxu0 }
 0x4db   : > { %v945_v47 = vpack.c.bf16 %v800_v46, %v797_v44  ;;  %v2926_v48 = vpop.f32.mrb[11].mxu0 }
 0x4dd   : > { %949 = vst.msk [vmem:[#allocation2] sm:$0xff] %vm466_vm2, %v945_v47 }
 0x4e4   : > { %v891_v49 = vpop.f32.mrb[12].mxu0 }
 0x4e5   : > { %v2937_v50 = vpop.f32.mrb[13].mxu0 }
 0x4e6   : > { %v894_v51 = vpop.f32.mrb[14].mxu0 }
 0x4e7   : > { %v947_v52 = vpack.c.bf16 %v894_v51, %v891_v49  ;;  %v2938_v53 = vpop.f32.mrb[15].mxu0 }
 0x4e8   : > { %v844_v54 = vpop.f32.mrb[16].mxu1 }
 0x4e9   : > { %951 = vst.msk [vmem:[#allocation2 + $0x10] sm:$0xff] %vm466_vm2, %v947_v52  ;;  %v2931_v55 = vpop.f32.mrb[17].mxu1 }
 0x4ea   : > { %v847_v56 = vpop.f32.mrb[18].mxu1 }
 0x4eb   : > { %v946_v57 = vpack.c.bf16 %v847_v56, %v844_v54  ;;  %v2932_v58 = vpop.f32.mrb[19].mxu1 }
 0x4ed   : > { %950 = vst.msk [vmem:[#allocation2 + $0x8] sm:$0xff] %vm466_vm2, %v946_v57 }
 0x51a   : > { %v1000_v60 = vpop.f32.mrb[16].mxu0 }
 0x51b   : > { %v1001_v62 = vadd.f32 %v1000_v60, %v954_v59  ;;  %v2949_v63 = vpop.f32.mrb[17].mxu0 }
 0x51c   : > { %v1003_v0 = vpop.f32.mrb[18].mxu0 }
 0x51d   : > { %v1004_v1 = vadd.f32 %v1003_v0, %v955_v61  ;;  %v938_v2 = vpop.f32.mrb[20].mxu1  ;;  %v2950_v3 = vpop.f32.mrb[19].mxu0  ;;  %v1160_v4 = vsel %vm664_vm3, %v1001_v62, -inf }
 0x51e   : > { %v2943_v5 = vpop.f32.mrb[21].mxu1  ;;  %1161 = vmax.xlane.f32.xlu0 %v1160_v4 }
 0x51f   : > { %v941_v6 = vpop.f32.mrb[22].mxu1  ;;  %v1163_v7 = vsel %vm664_vm3, %v1004_v1, -inf }
 0x520   : > { %v948_v8 = vpack.c.bf16 %v941_v6, %v938_v2  ;;  %v2944_v9 = vpop.f32.mrb[23].mxu1  ;;  %1164 = vmax.xlane.f32.xlu1 %v1163_v7 }
 0x522   : > { %952 = vst.msk [vmem:[#allocation2 + $0x18] sm:$0xff] %vm466_vm2, %v948_v8  ;;  %v1102_v10 = vpop.f32.mrb[20].mxu0 }
 0x523   : > { %v1103_v11 = vadd.f32 %v1102_v10, %v954_v59  ;;  %v2961_v12 = vpop.f32.mrb[21].mxu0 }
 0x524   : > { %v1105_v13 = vpop.f32.mrb[22].mxu0 }
 0x525   : > { %v1051_v15 = vpop.f32.mrb[24].mxu1  ;;  %v2962_v16 = vpop.f32.mrb[23].mxu0  ;;  %v1172_v17 = vsel %vm664_vm3, %v1103_v11, -inf  ;;  %v1106_v24 = vadd.f32 %v1105_v13, %v955_v61 }
 0x526   : > { %v1052_v18 = vadd.f32 %v1051_v15, %v954_v59  ;;  %v2955_v19 = vpop.f32.mrb[25].mxu1  ;;  %1173 = vmax.xlane.f32.xlu1 %v1172_v17 }
 0x527   : > { %v1054_v20 = vpop.f32.mrb[26].mxu1  ;;  %v1175_v37 = vsel %vm664_vm3, %v1106_v24, -inf }
 0x528   : > { %v1055_v21 = vadd.f32 %v1054_v20, %v955_v61  ;;  %v2956_v22 = vpop.f32.mrb[27].mxu1  ;;  %v1166_v23 = vsel %vm664_vm3, %v1052_v18, -inf }
 0x529   : > { %1167 = vmax.xlane.f32.xlu0 %v1166_v23 }
 0x52a   : > { %v1169_v25 = vsel %vm664_vm3, %v1055_v21, -inf }
 0x52d   : > { %1170 = vmax.xlane.f32.xlu0 %v1169_v25  ;;  %v1153_v26 = vpop.f32.mrb[28].mxu1 }
 0x52e   : > { %v1154_v27 = vadd.f32 %v1153_v26, %v954_v59  ;;  %v2967_v28 = vpop.f32.mrb[29].mxu1 }
 0x52f   : > { %v1156_v29 = vpop.f32.mrb[30].mxu1 }
 0x530   : > { %v1157_v30 = vadd.f32 %v1156_v29, %v955_v61  ;;  %v2968_v31 = vpop.f32.mrb[31].mxu1  ;;  %v1178_v36 = vsel %vm664_vm3, %v1154_v27, -inf }
 0x531   : > { %1179 = vmax.xlane.f32.xlu1 %v1178_v36  ;;  %1176 = vmax.xlane.f32.xlu0 %v1175_v37 }
 0x532   : > { %v1181_v38 = vsel %vm664_vm3, %v1157_v30, -inf }
 0x535   : > { %1182 = vmax.xlane.f32.xlu0 %v1181_v38 }
 0x542   : > { %1252 = vrot.lane.b32.xlu1 %v3875_v34, %s3571_s1 }
 0x546   : > { %1346 = vrot.lane.b32.xlu1 %v3877_v35, %s3571_s1 }
 0x54a   : > { %1393 = vrot.lane.b32.xlu1 %v3873_v33, %s3571_s1 }
 0x54b   : > { %1299 = vrot.lane.b32.xlu0 %v3871_v32, %s3571_s1 }
 0x5ab   : > { %v1162_v39 = vpop.xlane.xlu0 %1161 }
 0x5ac   : > { %v1184_v40 = vsub.f32 %v1001_v62, %v1162_v39 }
 0x5ad   : > { %v1165_v41 = vpop.xlane.xlu1 %1164 }
 0x5ae   : > { %v1192_v42 = vmul.f32 1.442695, %v1184_v40  ;;  %v1185_v43 = vsub.f32 %v1004_v1, %v1165_v41 }
 0x5b0   : > { %3255 = vpow2.f32 %v1192_v42  ;;  %v1194_v44 = vmul.f32 1.442695, %v1185_v43 }
 0x5b2   : > { %3257 = vpow2.f32 %v1194_v44 }
 0x5b3   : > { %v1174_v45 = vpop.xlane.xlu1 %1173 }
 0x5b4   : > { %v1188_v46 = vsub.f32 %v1103_v11, %v1174_v45 }
 0x5b6   : > { %v1168_v47 = vpop.xlane.xlu0 %1167  ;;  %v1200_v49 = vmul.f32 1.442695, %v1188_v46 }
 0x5b7   : > { %v1186_v48 = vsub.f32 %v1052_v18, %v1168_v47 }
 0x5b9   : > { %v1196_v50 = vmul.f32 1.442695, %v1186_v48 }
 0x5ba   : > { %v4023_v51 = vpop.eup %3255  ;;  %v1171_v52 = vpop.xlane.xlu0 %1170 }
 0x5bb   : > { %3259 = vpow2.f32 %v1196_v50  ;;  %v1187_v53 = vsub.f32 %v1055_v21, %v1171_v52  ;;  %v1208_v54 = vsel %vm664_vm3, %v4023_v51, 0.0 }
 0x5bc   : > { %v4027_v55 = vpop.eup %3257  ;;  %1209 = vadd.xlane.f32.xlu1 %v1208_v54  ;;  %3261 = vpow2.f32 %v1200_v49 }
 0x5bd   : > { %v1198_v56 = vmul.f32 1.442695, %v1187_v53  ;;  %v1211_v57 = vsel %vm664_vm3, %v4027_v55, 0.0 }
 0x5be   : > { %v1180_v58 = vpop.xlane.xlu1 %1179  ;;  %1212 = vadd.xlane.f32.xlu0 %v1211_v57  ;;  %v1177_v59 = vpop.xlane.xlu0 %1176 }
 0x5bf   : > { %3263 = vpow2.f32 %v1198_v56  ;;  %v1190_v60 = vsub.f32 %v1154_v27, %v1180_v58  ;;  %v1189_v61 = vsub.f32 %v1106_v24, %v1177_v59 }
 0x5c1   : > { %v1204_v62 = vmul.f32 1.442695, %v1190_v60  ;;  %v1202_v63 = vmul.f32 1.442695, %v1189_v61 }
 0x5c2   : > { %v1253_v0 = vpop.permute.xlu1 %1252  ;;  %v1183_v1 = vpop.xlane.xlu0 %1182 }
 0x5c3   : > { %3265 = vpow2.f32 %v1204_v62  ;;  %v1191_v2 = vsub.f32 %v1157_v30, %v1183_v1  ;;  %2970 = vmatpush3.bf16.msra.mxu0 %v1253_v0 }
 0x5c4   : > { %3267 = vpow2.f32 %v1202_v63  ;;  %2981 = vmatprep.subr.bf16.mxu0 %v3565_v14 }
 0x5c5   : > { %v3260_v3 = vpop.eup %3259  ;;  %v1206_v4 = vmul.f32 1.442695, %v1191_v2 }
 0x5c6   : > { %v1300_v5 = vpop.permute.xlu0 %1299  ;;  %v1214_v6 = vsel %vm664_vm3, %v3260_v3, 0.0  ;;  %v4033_v7 = vpop.eup %3261 }
 0x5c7   : > { %3269 = vpow2.f32 %v1206_v4  ;;  %1215 = vadd.xlane.f32.xlu1 %v1214_v6  ;;  %2976 = vmatpush3.bf16.msra.mxu1 %v1300_v5  ;;  %v1220_v9 = vsel %vm664_vm3, %v4033_v7, 0.0  ;;  %v1347_v18 = vpop.permute.xlu1 %1346 }
 0x5c8   : > { %2987 = vmatprep.subr.bf16.mxu1 %v3565_v14 }
 0x5c9   : > { %v3264_v8 = vpop.eup %3263 }
 0x5ca   : > { %v1217_v10 = vsel %vm664_vm3, %v3264_v8, 0.0 }
 0x5cb   : > { %1221 = vadd.xlane.f32.xlu1 %v1220_v9  ;;  %1218 = vadd.xlane.f32.xlu0 %v1217_v10  ;;  %v1394_v19 = vpop.permute.xlu1 %1393 }
 0x5cd   : > { %v4039_v11 = vpop.eup %3265 }
 0x5ce   : > { %v3268_v12 = vpop.eup %3267  ;;  %v1226_v13 = vsel %vm664_vm3, %v4039_v11, 0.0 }
 0x5cf   : > { %1227 = vadd.xlane.f32.xlu1 %v1226_v13  ;;  %v1223_v15 = vsel %vm664_vm3, %v3268_v12, 0.0 }
 0x5d0   : > { %1224 = vadd.xlane.f32.xlu0 %v1223_v15 }
 0x5d1   : > { %v3270_v16 = vpop.eup %3269 }
 0x5d2   : > { %v1229_v17 = vsel %vm664_vm3, %v3270_v16, 0.0 }
 0x5d4   : > { %1230 = vadd.xlane.f32.xlu0 %v1229_v17 }
 0x5e0   : > { %1521 = vrot.lane.b32.xlu1 %v3871_v32, %s3572_s12 }
 0x5e4   : > { %1572 = vrot.lane.b32.xlu1 %v3877_v35, %s3572_s12 }
 0x5e8   : > { %1623 = vrot.lane.b32.xlu1 %v3873_v33, %s3572_s12 }
 0x5ea   : > { %1470 = vrot.lane.b32.xlu0 %v3875_v34, %s3572_s12  ;;  %s4311_s12 = scalar_lea.hbm %s4372_s6, %s2808_s21 }
 0x5ec   : > { %1621 = vrot.lane.b32.xlu1 %v3873_v33, %s3573_s13 }
 0x5ee   : > { %1468 = vrot.lane.b32.xlu0 %v3875_v34, %s3573_s13 }
 0x5f2   : > { %1519 = vrot.lane.b32.xlu0 %v3871_v32, %s3573_s13 }
 0x5f6   : > { %1570 = vrot.lane.b32.xlu0 %v3877_v35, %s3573_s13  ;;  %s3465_s13 = scalar_lea.vmem %s4314_s8, 1024 }
 0x5f7   : > { %p3466_p13 = scmp.ne.s32.totalorder %s4314_s8, %s3465_s13 }
 0x5f9   : > { %p3467_p6 = pnand %p3466_p13, %p3781_p3 }
 0x5fb   : > { %p3468_p10 = pneg %p3467_p6 }
 0x649   : > { %v1210_v20 = vpop.xlane.xlu1 %1209 }
 0x64a   : > { %3271 = vrcp.f32 %v1210_v20 }
 0x64b   : > { %v1213_v21 = vpop.xlane.xlu0 %1212 }
 0x64c   : > { %3273 = vrcp.f32 %v1213_v21 }
 0x654   : > { %v3272_v22 = vpop.eup %3271  ;;  %v1216_v23 = vpop.xlane.xlu1 %1215 }
 0x655   : > { %v1240_v25 = vmul.f32 %v3272_v22, %v4023_v51  ;;  %3275 = vrcp.f32 %v1216_v23  ;;  %v1467_v23 = vld [vmem:[#allocation8 + $0x28] sm:$0xff] }
 0x656   : > { %v3274_v24 = vpop.eup %3273 }
 0x657   : > { %v1241_v26 = vmul.f32 %v3274_v24, %v4027_v55 }
 0x658   : > { %v1222_v27 = vpop.xlane.xlu1 %1221  ;;  %v1219_v28 = vpop.xlane.xlu0 %1218 }
 0x659   : > { %v1248_v29 = vpack.c.bf16 %v1241_v26, %v1240_v25  ;;  %3277 = vrcp.f32 %v1219_v28 }
 0x65a   : > { %3279 = vrcp.f32 %v1222_v27 }
 0x65b   : > { %2972 = vmatmul.mubr.msk.bf16.vlgmr.msra.gmra.mrb[24].mxu0 %vm664_vm3, %v1248_v29 }
 0x65c   : > { %2982 = vmatpush3.bf16.msra.mxu0 %v1347_v18  ;;  %2983 = vmatprep.mubr.msk.bf16.mxu0 %vm3566_vm1, %v3565_v14  ;;  %v1228_v30 = vpop.xlane.xlu1 %1227 }
 0x65d   : > { %v1225_v31 = vpop.xlane.xlu0 %1224  ;;  %2993 = vmatprep.subr.bf16.mxu0 %v3565_v14 }
 0x65e   : > { %3281 = vrcp.f32 %v1225_v31 }
 0x65f   : > { %3283 = vrcp.f32 %v1228_v30  ;;  %v3276_v37 = vpop.eup %3275 }
 0x660   : > { %v1242_v39 = vmul.f32 %v3276_v37, %v3260_v3  ;;  %v1522_v48 = vpop.permute.xlu1 %1521 }
 0x661   : > { %v1231_v36 = vpop.xlane.xlu0 %1230  ;;  %v1527_v57 = vsel %vm466_vm2, %v1522_v48, 0 }
 0x662   : > { %3285 = vrcp.f32 %v1231_v36 }
 0x663   : > { %v3278_v38 = vpop.eup %3277 }
 0x664   : > { %v1243_v40 = vmul.f32 %v3278_v38, %v3264_v8  ;;  %v3280_v41 = vpop.eup %3279  ;;  %v1573_v56 = vpop.permute.xlu1 %1572 }
 0x665   : > { %v1244_v44 = vmul.f32 %v3280_v41, %v4033_v7  ;;  %v1471_v47 = vpop.permute.xlu0 %1470  ;;  %v1578_v58 = vsel %vm466_vm2, %v1573_v56, 0 }
 0x666   : > { %v1249_v42 = vpack.c.bf16 %v1243_v40, %v1242_v39  ;;  %v1476_v53 = vsel %vm466_vm2, %v1471_v47, 0 }
 0x668   : > { %v3282_v43 = vpop.eup %3281  ;;  %2978 = vmatmul.mubr.msk.bf16.vlgmr.msra.gmra.mrb[32].mxu1 %vm664_vm3, %v1249_v42  ;;  %v1624_v60 = vpop.permute.xlu1 %1623 }
 0x669   : > { %v1245_v45 = vmul.f32 %v3282_v43, %v3268_v12  ;;  %v3284_v46 = vpop.eup %3283  ;;  %2988 = vmatpush3.bf16.msra.mxu1 %v1394_v19  ;;  %2989 = vmatprep.mubr.msk.bf16.mxu1 %vm3566_vm1, %v3565_v14  ;;  %v1469_v55 = vpop.permute.xlu0 %1468  ;;  %v1629_v61 = vsel %vm466_vm2, %v1624_v60, 0  ;;  %v1466_v19 = vld [vmem:[#allocation8 + $0x20] sm:$0xff] }
 0x66a   : > { %2999 = vmatprep.subr.bf16.mxu1 %v3565_v14  ;;  %v1246_v51 = vmul.f32 %v3284_v46, %v4039_v11 }
 0x66b   : > { %v1250_v49 = vpack.c.bf16 %v1245_v45, %v1244_v44 }
 0x66c   : > { %v3286_v50 = vpop.eup %3285  ;;  %v1622_v63 = vpop.permute.xlu1 %1621 }
 0x66d   : > { %v1247_v52 = vmul.f32 %v3286_v50, %v3270_v16  ;;  %2984 = vmatmul.mubr.msk.bf16.vlgmr.msra.gmra.mrb[28].mxu0 %vm664_vm3, %v1250_v49  ;;  %v1520_v59 = vpop.permute.xlu0 %1519 }
 0x66e   : > { %2994 = vmatpush3.bf16.xpose.msra.mxu0 %v1476_v53  ;;  %2995 = vmatprep.mubr.msk.bf16.mxu0 %vm3566_vm1, %v3565_v14 }
 0x66f   : > { %v1251_v54 = vpack.c.bf16 %v1247_v52, %v1246_v51  ;;  %3005 = vmatprep.subr.bf16.mxu0 %v3565_v14 }
 0x671   : > { %2990 = vmatmul.mubr.msk.bf16.vlgmr.msra.gmra.mrb[36].mxu1 %vm664_vm3, %v1251_v54  ;;  %v1571_v62 = vpop.permute.xlu0 %1570 }
 0x672   : > { %3001 = vmatprep.mubr.msk.bf16.mxu1 %vm3566_vm1, %v3565_v14  ;;  %3000 = vmatpush3.bf16.xpose.msra.mxu1 %v1527_v57 }
 0x673   : > { %3011 = vmatprep.subr.bf16.mxu1 %v3565_v14 }
 0x675   : > { %2996 = vmatmul.mubr.msk.bf16.vlgmr.msra.gmra.mrb[32].mxu0 %vm466_vm2, %v1469_v55 }
 0x676   : > { %3006 = vmatpush3.bf16.xpose.msra.mxu0 %v1578_v58  ;;  %3007 = vmatprep.mubr.msk.bf16.mxu0 %vm3566_vm1, %v3565_v14 }
 0x677   : > { %3017 = vmatprep.subr.bf16.mxu0 %v3565_v14 }
 0x679   : > { %3002 = vmatmul.mubr.msk.bf16.vlgmr.msra.gmra.mrb[40].mxu1 %vm466_vm2, %v1520_v59 }
 0x67a   : > { %3012 = vmatpush3.bf16.xpose.msra.mxu1 %v1629_v61  ;;  %3013 = vmatprep.mubr.msk.bf16.mxu1 %vm3566_vm1, %v3565_v14 }
 0x67b   : > { %3023 = vmatprep.subr.bf16.mxu1 %v3565_v14 }
 0x67d   : > { %3008 = vmatmul.mubr.msk.bf16.vlgmr.msra.gmra.mrb[36].mxu0 %vm466_vm2, %v1571_v62 }
 0x67e   : > { %3019 = vmatprep.mubr.msk.bf16.mxu0 %vm3566_vm1, %v3565_v14 }
 0x681   : > { %3014 = vmatmul.mubr.msk.bf16.vlgmr.msra.gmra.mrb[44].mxu1 %vm466_vm2, %v1622_v63 }
 0x682   : > { %3025 = vmatprep.mubr.msk.bf16.mxu1 %vm3566_vm1, %v3565_v14 }
 0x72e   : > { %v4091_v0 = vpop.f32.mrb[24].mxu0 }
 0x72f   : > { %v2973_v1 = vpop.f32.mrb[25].mxu0 }
 0x730   : > { %v4093_v2 = vpop.f32.mrb[26].mxu0 }
 0x731   : > { %v1440_v3 = vpack.c.bf16 %v4093_v2, %v4091_v0  ;;  %v2974_v4 = vpop.f32.mrb[27].mxu0 }
 0x73b   : > { %v4097_v5 = vpop.f32.mrb[32].mxu1 }
 0x73c   : > { %v2979_v6 = vpop.f32.mrb[33].mxu1 }
 0x73d   : > { %v4099_v7 = vpop.f32.mrb[34].mxu1 }
 0x73e   : > { %v1441_v8 = vpack.c.bf16 %v4099_v7, %v4097_v5  ;;  %v2980_v9 = vpop.f32.mrb[35].mxu1 }
 0x740   : > { %v4103_v10 = vpop.f32.mrb[28].mxu0 }
 0x741   : > { %v2985_v11 = vpop.f32.mrb[29].mxu0 }
 0x742   : > { %v4105_v12 = vpop.f32.mrb[30].mxu0 }
 0x743   : > { %v1442_v13 = vpack.c.bf16 %v4105_v12, %v4103_v10  ;;  %v2986_v15 = vpop.f32.mrb[31].mxu0 }
 0x744   : > { %v4109_v16 = vpop.f32.mrb[36].mxu1 }
 0x745   : > { %v2991_v17 = vpop.f32.mrb[37].mxu1 }
 0x746   : > { %v4111_v18 = vpop.f32.mrb[38].mxu1 }
 0x747   : > { %v1443_v20 = vpack.c.bf16 %v4111_v18, %v4109_v16  ;;  %v2992_v21 = vpop.f32.mrb[39].mxu1 }
 0x748   : > { %v1512_v22 = vpop.f32.mrb[32].mxu0 }
 0x749   : > { %v1513_v24 = vadd.f32 %v1512_v22, %v1466_v19  ;;  %v2997_v25 = vpop.f32.mrb[33].mxu0 }
 0x74a   : > { %v1515_v26 = vpop.f32.mrb[34].mxu0 }
 0x74b   : > { %v1516_v27 = vadd.f32 %v1515_v26, %v1467_v23  ;;  %v2998_v28 = vpop.f32.mrb[35].mxu0  ;;  %v1672_v29 = vsel %vm664_vm3, %v1513_v24, -inf }
 0x74c   : > { %1673 = vmax.xlane.f32.xlu0 %v1672_v29  ;;  %v1563_v30 = vpop.f32.mrb[40].mxu1 }
 0x74d   : > { %v1675_v31 = vsel %vm664_vm3, %v1516_v27, -inf  ;;  %v1564_v36 = vadd.f32 %v1563_v30, %v1466_v19  ;;  %v3003_v37 = vpop.f32.mrb[41].mxu1 }
 0x74e   : > { %1676 = vmax.xlane.f32.xlu1 %v1675_v31  ;;  %v1566_v38 = vpop.f32.mrb[42].mxu1 }
 0x74f   : > { %v1567_v39 = vadd.f32 %v1566_v38, %v1467_v23  ;;  %v3004_v40 = vpop.f32.mrb[43].mxu1  ;;  %v1678_v41 = vsel %vm664_vm3, %v1564_v36, -inf }
 0x750   : > { %v1614_v42 = vpop.f32.mrb[36].mxu0  ;;  %1679 = vmax.xlane.f32.xlu0 %v1678_v41 }
 0x751   : > { %v1615_v43 = vadd.f32 %v1614_v42, %v1466_v19  ;;  %v3009_v44 = vpop.f32.mrb[37].mxu0  ;;  %v1681_v49 = vsel %vm664_vm3, %v1567_v39, -inf }
 0x752   : > { %v1617_v45 = vpop.f32.mrb[38].mxu0 }
 0x753   : > { %v3010_v46 = vpop.f32.mrb[39].mxu0  ;;  %v1684_v47 = vsel %vm664_vm3, %v1615_v43, -inf  ;;  %v1618_v48 = vadd.f32 %v1617_v45, %v1467_v23 }
 0x754   : > { %1685 = vmax.xlane.f32.xlu1 %v1684_v47  ;;  %1682 = vmax.xlane.f32.xlu0 %v1681_v49  ;;  %v1665_v50 = vpop.f32.mrb[44].mxu1 }
 0x755   : > { %v1666_v51 = vadd.f32 %v1665_v50, %v1466_v19  ;;  %v3015_v52 = vpop.f32.mrb[45].mxu1  ;;  %v1687_v57 = vsel %vm664_vm3, %v1618_v48, -inf }
 0x756   : > { %v1668_v53 = vpop.f32.mrb[46].mxu1 }
 0x757   : > { %v1669_v54 = vadd.f32 %v1668_v53, %v1467_v23  ;;  %v3016_v55 = vpop.f32.mrb[47].mxu1  ;;  %v1690_v56 = vsel %vm664_vm3, %v1666_v51, -inf }
 0x758   : > { %1691 = vmax.xlane.f32.xlu1 %v1690_v56  ;;  %1688 = vmax.xlane.f32.xlu0 %v1687_v57 }
 0x759   : > { %v1693_v58 = vsel %vm664_vm3, %v1669_v54, -inf }
 0x75c   : > { %1694 = vmax.xlane.f32.xlu0 %v1693_v58 }
 0x769   : > { %1764 = vrot.lane.b32.xlu1 %v3875_v34, %s3574_s19 }
 0x76d   : > { %1858 = vrot.lane.b32.xlu1 %v3877_v35, %s3574_s19 }
 0x771   : > { %1905 = vrot.lane.b32.xlu1 %v3873_v33, %s3574_s19 }
 0x772   : > { %1811 = vrot.lane.b32.xlu0 %v3871_v32, %s3574_s19  ;;  %s3581_s19 = smov [#allocation11]  }
 0x7d9   : > { %v1674_v59 = vpop.xlane.xlu0 %1673 }
 0x7da   : > { %v1696_v60 = vsub.f32 %v1513_v24, %v1674_v59 }
 0x7db   : > { %v1677_v61 = vpop.xlane.xlu1 %1676 }
 0x7dc   : > { %v1704_v62 = vmul.f32 1.442695, %v1696_v60  ;;  %v1697_v63 = vsub.f32 %v1516_v27, %v1677_v61 }
 0x7dd   : > { %v1680_v4 = vpop.xlane.xlu0 %1679 }
 0x7de   : > { %3287 = vpow2.f32 %v1704_v62  ;;  %v1706_v1 = vmul.f32 1.442695, %v1697_v63  ;;  %v1698_v6 = vsub.f32 %v1564_v36, %v1680_v4 }
 0x7e0   : > { %3289 = vpow2.f32 %v1706_v1  ;;  %v1708_v9 = vmul.f32 1.442695, %v1698_v6 }
 0x7e1   : > { %v1686_v11 = vpop.xlane.xlu1 %1685  ;;  %v1683_v17 = vpop.xlane.xlu0 %1682 }
 0x7e2   : > { %v1700_v15 = vsub.f32 %v1615_v43, %v1686_v11  ;;  %3291 = vpow2.f32 %v1708_v9  ;;  %v1699_v19 = vsub.f32 %v1567_v39, %v1683_v17 }
 0x7e4   : > { %v1712_v21 = vmul.f32 1.442695, %v1700_v15  ;;  %v1710_v22 = vmul.f32 1.442695, %v1699_v19 }
 0x7e5   : > { %v1692_v23 = vpop.xlane.xlu1 %1691  ;;  %v1689_v25 = vpop.xlane.xlu0 %1688 }
 0x7e6   : > { %3293 = vpow2.f32 %v1712_v21  ;;  %v1702_v24 = vsub.f32 %v1666_v51, %v1692_v23  ;;  %v1701_v26 = vsub.f32 %v1618_v48, %v1689_v25 }
 0x7e7   : > { %3295 = vpow2.f32 %v1710_v22 }
 0x7e8   : > { %v3288_v27 = vpop.eup %3287  ;;  %v1716_v28 = vmul.f32 1.442695, %v1702_v24  ;;  %v1714_v29 = vmul.f32 1.442695, %v1701_v26 }
 0x7e9   : > { %v1720_v30 = vsel %vm664_vm3, %v3288_v27, 0.0  ;;  %v1765_v36 = vpop.permute.xlu1 %1764  ;;  %v1695_v37 = vpop.xlane.xlu0 %1694 }
 0x7ea   : > { %v3290_v31 = vpop.eup %3289  ;;  %1721 = vadd.xlane.f32.xlu1 %v1720_v30  ;;  %3297 = vpow2.f32 %v1716_v28  ;;  %v1703_v38 = vsub.f32 %v1669_v54, %v1695_v37  ;;  %3018 = vmatpush3.bf16.msra.mxu0 %v1765_v36 }
 0x7eb   : > { %v1723_v39 = vsel %vm664_vm3, %v3290_v31, 0.0  ;;  %3299 = vpow2.f32 %v1714_v29  ;;  %3029 = vmatprep.subr.bf16.mxu0 %v3565_v14 }
 0x7ec   : > { %1724 = vadd.xlane.f32.xlu0 %v1723_v39  ;;  %v3292_v40 = vpop.eup %3291  ;;  %v1718_v41 = vmul.f32 1.442695, %v1703_v38 }
 0x7ed   : > { %v1812_v42 = vpop.permute.xlu0 %1811  ;;  %v1726_v43 = vsel %vm664_vm3, %v3292_v40, 0.0  ;;  %v1859_v54 = vpop.permute.xlu1 %1858 }
 0x7ee   : > { %3301 = vpow2.f32 %v1718_v41  ;;  %1727 = vadd.xlane.f32.xlu1 %v1726_v43  ;;  %3024 = vmatpush3.bf16.msra.mxu1 %v1812_v42 }
 0x7ef   : > { %3035 = vmatprep.subr.bf16.mxu1 %v3565_v14 }
 0x7f0   : > { %v3294_v44 = vpop.eup %3293 }
 0x7f1   : > { %v3296_v45 = vpop.eup %3295  ;;  %v1732_v46 = vsel %vm664_vm3, %v3294_v44, 0.0  ;;  %v1906_v55 = vpop.permute.xlu1 %1905 }
 0x7f2   : > { %v1729_v47 = vsel %vm664_vm3, %v3296_v45, 0.0  ;;  %1733 = vadd.xlane.f32.xlu1 %v1732_v46 }
 0x7f3   : > { %1730 = vadd.xlane.f32.xlu0 %v1729_v47 }
 0x7f4   : > { %v4134_v48 = vpop.eup %3297 }
 0x7f5   : > { %v3300_v49 = vpop.eup %3299  ;;  %v1738_v50 = vsel %vm664_vm3, %v4134_v48, 0.0 }
 0x7f6   : > { %1739 = vadd.xlane.f32.xlu1 %v1738_v50  ;;  %v1735_v51 = vsel %vm664_vm3, %v3300_v49, 0.0 }
 0x7f7   : > { %1736 = vadd.xlane.f32.xlu0 %v1735_v51 }
 0x7f8   : > { %v3302_v52 = vpop.eup %3301 }
 0x7f9   : > { %v1741_v53 = vsel %vm664_vm3, %v3302_v52, 0.0 }
 0x7fb   : > { %1742 = vadd.xlane.f32.xlu0 %v1741_v53 }
 0x807   : > { %2033 = vrot.lane.b32.xlu1 %v3871_v32, %s3575_s30 }
 0x80b   : > { %2084 = vrot.lane.b32.xlu1 %v3877_v35, %s3575_s30 }
 0x80f   : > { %2135 = vrot.lane.b32.xlu1 %v3873_v33, %s3575_s30 }
 0x811   : > { %1982 = vrot.lane.b32.xlu0 %v3875_v34, %s3575_s30  ;;  %s3469_s30 = sshll.u32 %s3581_s19, 4  ;;  %s3470_s30 = int_to_ptr.vmem [resolvable:$false] %s3469_s30 }
 0x812   : > { %p3472_p11 = scmp.lt.s32.totalorder %s4314_s8, %s3470_s30 }
 0x813   : > { %2133 = vrot.lane.b32.xlu1 %v3873_v33, %s3576_s28 }
 0x815   : > { %1980 = vrot.lane.b32.xlu0 %v3875_v34, %s3576_s28 }
 0x819   : > { %2031 = vrot.lane.b32.xlu0 %v3871_v32, %s3576_s28 }
 0x81d   : > { %2082 = vrot.lane.b32.xlu0 %v3877_v35, %s3576_s28  ;;  %s3471_s28 = scalar_lea.vmem %s3470_s30, 2048 }
 0x81e   : > { %p3473_p5 = scmp.lt.s32.totalorder %s3471_s28, %s3465_s13 }
 0x820   : > { %p3474_p9 = por %p3473_p5, %p3472_p11 }
 0x822   : > { %p3475_p0 = pnand %p3474_p9, %p3468_p10 }
 0x877   : > { %v1722_v56 = vpop.xlane.xlu1 %1721 }
 0x878   : > { %3303 = vrcp.f32 %v1722_v56 }
 0x879   : > { %v1725_v57 = vpop.xlane.xlu0 %1724 }
 0x87a   : > { %3305 = vrcp.f32 %v1725_v57 }
 0x87b   : > { %v1728_v58 = vpop.xlane.xlu1 %1727 }
 0x87c   : > { %3307 = vrcp.f32 %v1728_v58 }
 0x87f   : > { %v1734_v59 = vpop.xlane.xlu1 %1733 }
 0x880   : > { %v1731_v60 = vpop.xlane.xlu0 %1730 }
 0x881   : > { %3309 = vrcp.f32 %v1731_v60 }
 0x882   : > { %v3304_v61 = vpop.eup %3303  ;;  %3311 = vrcp.f32 %v1734_v59 }
 0x883   : > { %v1752_v63 = vmul.f32 %v3304_v61, %v3288_v27  ;;  %v1740_v4 = vpop.xlane.xlu1 %1739 }
 0x884   : > { %v3306_v62 = vpop.eup %3305  ;;  %v1737_v6 = vpop.xlane.xlu0 %1736 }
 0x885   : > { %v1753_v1 = vmul.f32 %v3306_v62, %v3290_v31  ;;  %3313 = vrcp.f32 %v1737_v6 }
 0x886   : > { %3315 = vrcp.f32 %v1740_v4  ;;  %v3308_v15 = vpop.eup %3307 }
 0x887   : > { %v1760_v9 = vpack.c.bf16 %v1753_v1, %v1752_v63  ;;  %v1754_v19 = vmul.f32 %v3308_v15, %v3292_v40  ;;  %v2034_v29 = vpop.permute.xlu1 %2033 }
 0x888   : > { %v1743_v11 = vpop.xlane.xlu0 %1742  ;;  %v2039_v42 = vsel %vm466_vm2, %v2034_v29, 0 }
 0x889   : > { %3020 = vmatmul.mubr.msk.bf16.vlgmr.msra.gmra.mrb[40].mxu0 %vm664_vm3, %v1760_v9  ;;  %3317 = vrcp.f32 %v1743_v11  ;;  %v1978_v9 = vld [vmem:[#allocation8 + $0x30] sm:$0xff] }
 0x88a   : > { %3030 = vmatpush3.bf16.msra.mxu0 %v1859_v54  ;;  %3031 = vmatprep.mubr.msk.bf16.mxu0 %vm3566_vm1, %v3565_v14 }
 0x88b   : > { %3041 = vmatprep.subr.bf16.mxu0 %v3565_v14  ;;  %v3310_v17 = vpop.eup %3309  ;;  %v2085_v41 = vpop.permute.xlu1 %2084 }
 0x88c   : > { %v1755_v21 = vmul.f32 %v3310_v17, %v3296_v45  ;;  %v3312_v22 = vpop.eup %3311  ;;  %v1983_v28 = vpop.permute.xlu0 %1982  ;;  %v2090_v43 = vsel %vm466_vm2, %v2085_v41, 0 }
 0x88d   : > { %v1756_v24 = vmul.f32 %v3312_v22, %v3294_v44  ;;  %v1988_v38 = vsel %vm466_vm2, %v1983_v28, 0 }
 0x88e   : > { %v1761_v23 = vpack.c.bf16 %v1755_v21, %v1754_v19  ;;  %v1979_v19 = vld [vmem:[#allocation8 + $0x38] sm:$0xff] }
 0x88f   : > { %v3314_v25 = vpop.eup %3313  ;;  %v2136_v45 = vpop.permute.xlu1 %2135 }
 0x890   : > { %v1757_v26 = vmul.f32 %v3314_v25, %v3300_v49  ;;  %3026 = vmatmul.mubr.msk.bf16.vlgmr.msra.gmra.mrb[48].mxu1 %vm664_vm3, %v1761_v23  ;;  %v3316_v27 = vpop.eup %3315  ;;  %v1981_v40 = vpop.permute.xlu0 %1980  ;;  %v2141_v46 = vsel %vm466_vm2, %v2136_v45, 0 }
 0x891   : > { %3036 = vmatpush3.bf16.msra.mxu1 %v1906_v55  ;;  %3037 = vmatprep.mubr.msk.bf16.mxu1 %vm3566_vm1, %v3565_v14  ;;  %v1758_v36 = vmul.f32 %v3316_v27, %v4134_v48 }
 0x892   : > { %v1762_v30 = vpack.c.bf16 %v1757_v26, %v1756_v24  ;;  %3047 = vmatprep.subr.bf16.mxu1 %v3565_v14 }
 0x893   : > { %v3318_v31 = vpop.eup %3317  ;;  %v2134_v48 = vpop.permute.xlu1 %2133 }
 0x894   : > { %v1759_v37 = vmul.f32 %v3318_v31, %v3302_v52  ;;  %3032 = vmatmul.mubr.msk.bf16.vlgmr.msra.gmra.mrb[44].mxu0 %vm664_vm3, %v1762_v30  ;;  %v2032_v44 = vpop.permute.xlu0 %2031 }
 0x895   : > { %3042 = vmatpush3.bf16.xpose.msra.mxu0 %v1988_v38  ;;  %3043 = vmatprep.mubr.msk.bf16.mxu0 %vm3566_vm1, %v3565_v14 }
 0x896   : > { %v1763_v39 = vpack.c.bf16 %v1759_v37, %v1758_v36  ;;  %3053 = vmatprep.subr.bf16.mxu0 %v3565_v14 }
 0x898   : > { %3038 = vmatmul.mubr.msk.bf16.vlgmr.msra.gmra.mrb[52].mxu1 %vm664_vm3, %v1763_v39  ;;  %v2083_v47 = vpop.permute.xlu0 %2082 }
 0x899   : > { %3049 = vmatprep.mubr.msk.bf16.mxu1 %vm3566_vm1, %v3565_v14 }
 0x89a   : > { %3048 = vmatpush3.bf16.xpose.msra.mxu1 %v2039_v42 }
 0x89b   : > { %3059 = vmatprep.subr.bf16.mxu1 %v3565_v14 }
 0x89c   : > { %3044 = vmatmul.mubr.msk.bf16.vlgmr.msra.gmra.mrb[48].mxu0 %vm466_vm2, %v1981_v40 }
 0x89d   : > { %3054 = vmatpush3.bf16.xpose.msra.mxu0 %v2090_v43  ;;  %3055 = vmatprep.mubr.msk.bf16.mxu0 %vm3566_vm1, %v3565_v14 }
 0x89e   : > { %3065 = vmatprep.subr.bf16.mxu0 %v3565_v14 }
 0x8a1   : > { %3050 = vmatmul.mubr.msk.bf16.vlgmr.msra.gmra.mrb[56].mxu1 %vm466_vm2, %v2032_v44 }
 0x8a2   : > { %3060 = vmatpush3.bf16.xpose.msra.mxu1 %v2141_v46  ;;  %3061 = vmatprep.mubr.msk.bf16.mxu1 %vm3566_vm1, %v3565_v14 }
 0x8a3   : > { %3071 = vmatprep.subr.bf16.mxu1 %v3565_v14 }
 0x8a4   : > { %3056 = vmatmul.mubr.msk.bf16.vlgmr.msra.gmra.mrb[52].mxu0 %vm466_vm2, %v2083_v47 }
 0x8a5   : > { %3067 = vmatprep.mubr.msk.bf16.mxu0 %vm3566_vm1, %v3565_v14 }
 0x8a9   : > { %3062 = vmatmul.mubr.msk.bf16.vlgmr.msra.gmra.mrb[60].mxu1 %vm466_vm2, %v2134_v48 }
 0x8aa   : > { %3073 = vmatprep.mubr.msk.bf16.mxu1 %vm3566_vm1, %v3565_v14 }
 0x95c   : > { %v4183_v49 = vpop.f32.mrb[40].mxu0 }
 0x95d   : > { %v3021_v50 = vpop.f32.mrb[41].mxu0 }
 0x95e   : > { %v4185_v51 = vpop.f32.mrb[42].mxu0 }
 0x95f   : > { %v1952_v52 = vpack.c.bf16 %v4185_v51, %v4183_v49  ;;  %v3022_v53 = vpop.f32.mrb[43].mxu0 }
 0x963   : > { %v4189_v54 = vpop.f32.mrb[48].mxu1 }
 0x964   : > { %v3027_v55 = vpop.f32.mrb[49].mxu1 }
 0x965   : > { %v4191_v56 = vpop.f32.mrb[50].mxu1 }
 0x966   : > { %v1953_v57 = vpack.c.bf16 %v4191_v56, %v4189_v54  ;;  %v3028_v58 = vpop.f32.mrb[51].mxu1 }
 0x967   : > { %v4195_v59 = vpop.f32.mrb[44].mxu0 }
 0x968   : > { %v3033_v60 = vpop.f32.mrb[45].mxu0 }
 0x969   : > { %v4197_v61 = vpop.f32.mrb[46].mxu0 }
 0x96a   : > { %v1954_v62 = vpack.c.bf16 %v4197_v61, %v4195_v59  ;;  %v3034_v63 = vpop.f32.mrb[47].mxu0 }
 0x96b   : > { %v4201_v1 = vpop.f32.mrb[52].mxu1 }
 0x96c   : > { %v3039_v4 = vpop.f32.mrb[53].mxu1 }
 0x96d   : > { %v4203_v6 = vpop.f32.mrb[54].mxu1 }
 0x96e   : > { %v1955_v11 = vpack.c.bf16 %v4203_v6, %v4201_v1  ;;  %v3040_v15 = vpop.f32.mrb[55].mxu1 }
 0x96f   : > { %v2024_v17 = vpop.f32.mrb[48].mxu0 }
 0x970   : > { %v2025_v21 = vadd.f32 %v2024_v17, %v1978_v9  ;;  %v3045_v22 = vpop.f32.mrb[49].mxu0 }
 0x971   : > { %v2027_v23 = vpop.f32.mrb[50].mxu0 }
 0x972   : > { %v2028_v25 = vadd.f32 %v2027_v23, %v1979_v19  ;;  %v3046_v24 = vpop.f32.mrb[51].mxu0  ;;  %v2184_v26 = vsel %vm664_vm3, %v2025_v21, -inf }
 0x973   : > { %2185 = vmax.xlane.f32.xlu0 %v2184_v26 }
 0x974   : > { %v2075_v27 = vpop.f32.mrb[56].mxu1  ;;  %v2187_v28 = vsel %vm664_vm3, %v2028_v25, -inf }
 0x975   : > { %v2076_v29 = vadd.f32 %v2075_v27, %v1978_v9  ;;  %v3051_v30 = vpop.f32.mrb[57].mxu1  ;;  %2188 = vmax.xlane.f32.xlu1 %v2187_v28 }
 0x976   : > { %v2078_v31 = vpop.f32.mrb[58].mxu1 }
 0x977   : > { %v2079_v36 = vadd.f32 %v2078_v31, %v1979_v19  ;;  %v3052_v37 = vpop.f32.mrb[59].mxu1  ;;  %v2190_v38 = vsel %vm664_vm3, %v2076_v29, -inf  ;;  %v2126_v39 = vpop.f32.mrb[52].mxu0 }
 0x978   : > { %2191 = vmax.xlane.f32.xlu0 %v2190_v38  ;;  %v2127_v40 = vadd.f32 %v2126_v39, %v1978_v9  ;;  %v3057_v41 = vpop.f32.mrb[53].mxu0 }
 0x979   : > { %v2129_v42 = vpop.f32.mrb[54].mxu0  ;;  %v2193_v46 = vsel %vm664_vm3, %v2079_v36, -inf }
 0x97a   : > { %v3058_v43 = vpop.f32.mrb[55].mxu0  ;;  %v2196_v44 = vsel %vm664_vm3, %v2127_v40, -inf  ;;  %v2130_v45 = vadd.f32 %v2129_v42, %v1979_v19 }
 0x97b   : > { %2197 = vmax.xlane.f32.xlu1 %v2196_v44 }
 0x97c   : > { %2194 = vmax.xlane.f32.xlu0 %v2193_v46  ;;  %v2177_v47 = vpop.f32.mrb[60].mxu1  ;;  %v2199_v63 = vsel %vm664_vm3, %v2130_v45, -inf }
 0x97d   : > { %v2178_v48 = vadd.f32 %v2177_v47, %v1978_v9  ;;  %v3063_v50 = vpop.f32.mrb[61].mxu1 }
 0x97e   : > { %v2180_v53 = vpop.f32.mrb[62].mxu1 }
 0x97f   : > { %v2181_v55 = vadd.f32 %v2180_v53, %v1979_v19  ;;  %v3064_v58 = vpop.f32.mrb[63].mxu1  ;;  %v2202_v60 = vsel %vm664_vm3, %v2178_v48, -inf }
 0x980   : > { %2203 = vmax.xlane.f32.xlu1 %v2202_v60  ;;  %2200 = vmax.xlane.f32.xlu0 %v2199_v63 }
 0x981   : > { %v2205_v4 = vsel %vm664_vm3, %v2181_v55, -inf }
 0x984   : > { %2206 = vmax.xlane.f32.xlu0 %v2205_v4 }
 0x991   : > { %2276 = vrot.lane.b32.xlu1 %v3875_v34, %s3577_s11 }
 0xa00   : > { %v2186_v15 = vpop.xlane.xlu0 %2185 }
 0xa01   : > { %v2208_v17 = vsub.f32 %v2025_v21, %v2186_v15 }
 0xa02   : > { %v2189_v9 = vpop.xlane.xlu1 %2188 }
 0xa03   : > { %v2216_v22 = vmul.f32 1.442695, %v2208_v17  ;;  %v2209_v23 = vsub.f32 %v2028_v25, %v2189_v9 }
 0xa05   : > { %3319 = vpow2.f32 %v2216_v22  ;;  %v2218_v19 = vmul.f32 1.442695, %v2209_v23  ;;  %v2192_v24 = vpop.xlane.xlu0 %2191 }
 0xa06   : > { %v2210_v26 = vsub.f32 %v2076_v29, %v2192_v24 }
 0xa07   : > { %3321 = vpow2.f32 %v2218_v19 }
 0xa08   : > { %v2220_v27 = vmul.f32 1.442695, %v2210_v26  ;;  %v2198_v28 = vpop.xlane.xlu1 %2197 }
 0xa09   : > { %v2212_v30 = vsub.f32 %v2127_v40, %v2198_v28  ;;  %v2195_v31 = vpop.xlane.xlu0 %2194 }
 0xa0a   : > { %3323 = vpow2.f32 %v2220_v27  ;;  %v2211_v37 = vsub.f32 %v2079_v36, %v2195_v31 }
 0xa0b   : > { %v2224_v38 = vmul.f32 1.442695, %v2212_v30 }
 0xa0c   : > { %v2222_v39 = vmul.f32 1.442695, %v2211_v37 }
 0xa0d   : > { %3325 = vpow2.f32 %v2224_v38  ;;  %v2204_v34 = vpop.xlane.xlu1 %2203  ;;  %v2201_v41 = vpop.xlane.xlu0 %2200 }
 0xa0e   : > { %3327 = vpow2.f32 %v2222_v39  ;;  %v2214_v21 = vsub.f32 %v2178_v48, %v2204_v34  ;;  %v2213_v42 = vsub.f32 %v2130_v45, %v2201_v41 }
 0xa0f   : > { %v3320_v25 = vpop.eup %3319 }
 0xa10   : > { %v2228_v43 = vmul.f32 1.442695, %v2214_v21  ;;  %v2226_v44 = vmul.f32 1.442695, %v2213_v42  ;;  %v2232_v29 = vsel %vm664_vm3, %v3320_v25, 0.0 }
 0xa11   : > { %v3322_v46 = vpop.eup %3321  ;;  %v2277_v47 = vpop.permute.xlu1 %2276  ;;  %2233 = vadd.xlane.f32.xlu1 %v2232_v29 }
 0xa12   : > { %v2207_v50 = vpop.xlane.xlu0 %2206  ;;  %3329 = vpow2.f32 %v2228_v43  ;;  %3066 = vmatpush3.bf16.msra.mxu0 %v2277_v47  ;;  %v2235_v36 = vsel %vm664_vm3, %v3322_v46, 0.0  ;;  %v3221_v43 = vld [vmem:[#allocation9] sm:$0xff]   ;;  %v3222_v47 = vld [vmem:[#allocation9 + $0x8] sm:$0xff]  }
 0xa13   : > { %v2215_v40 = vsub.f32 %v2181_v55, %v2207_v50  ;;  %3331 = vpow2.f32 %v2226_v44  ;;  %2236 = vadd.xlane.f32.xlu0 %v2235_v36  ;;  %3077 = vmatprep.subr.bf16.mxu0 %v3565_v14 }
 0xa14   : > { %v3324_v48 = vpop.eup %3323 }
 0xa15   : > { %v2230_v45 = vmul.f32 1.442695, %v2215_v40  ;;  %v2238_v53 = vsel %vm664_vm3, %v3324_v48, 0.0 }
 0xa16   : > { %2239 = vadd.xlane.f32.xlu1 %v2238_v53 }
 0xa17   : > { %3333 = vpow2.f32 %v2230_v45  ;;  %v4221_v58 = vpop.eup %3325 }
 0xa18   : > { %v3328_v60 = vpop.eup %3327  ;;  %v2244_v63 = vsel %vm664_vm3, %v4221_v58, 0.0 }
 0xa19   : > { %v2241_v55 = vsel %vm664_vm3, %v3328_v60, 0.0 }
 0xa1a   : > { %2245 = vadd.xlane.f32.xlu1 %v2244_v63  ;;  %2242 = vadd.xlane.f32.xlu0 %v2241_v55 }
 0xa1c   : > { %v4226_v4 = vpop.eup %3329 }
 0xa1d   : > { %v3332_v15 = vpop.eup %3331  ;;  %v2250_v17 = vsel %vm664_vm3, %v4226_v4, 0.0 }
 0xa1e   : > { %2251 = vadd.xlane.f32.xlu1 %v2250_v17  ;;  %v2247_v9 = vsel %vm664_vm3, %v3332_v15, 0.0 }
 0xa1f   : > { %2248 = vadd.xlane.f32.xlu0 %v2247_v9 }
 0xa21   : > { %v4231_v22 = vpop.eup %3333 }
 0xa22   : > { %v2253_v23 = vsel %vm664_vm3, %v4231_v22, 0.0 }
 0xa23   : > { %2254 = vadd.xlane.f32.xlu0 %v2253_v23 }
 0xa2f   : > { %2370 = vrot.lane.b32.xlu1 %v3877_v35, %s3577_s11 }
 0xa33   : > { %2417 = vrot.lane.b32.xlu1 %v3873_v33, %s3577_s11 }
 0xa37   : > { %1450 = vrot.lane.b32.xlu1 %v1441_v8, %s3578_s14 }
 0xa39   : > { %2323 = vrot.lane.b32.xlu0 %v3871_v32, %s3577_s11 }
 0xa3b   : > { %1962 = vrot.lane.b32.xlu1 %v1953_v57, %s3579_s15 }
 0xa3d   : > { %1448 = vrot.lane.b32.xlu0 %v1440_v3, %s3578_s14 }
 0xa3f   : > { %1454 = vrot.lane.b32.xlu1 %v1443_v20, %s3578_s14 }
 0xa41   : > { %1960 = vrot.lane.b32.xlu0 %v1952_v52, %s3579_s15 }
 0xa45   : > { %1452 = vrot.lane.b32.xlu0 %v1442_v13, %s3578_s14 }
 0xa9e   : > { %v2234_v32 = vpop.xlane.xlu1 %2233 }
 0xa9f   : > { %3335 = vrcp.f32 %v2234_v32 }
 0xaa0   : > { %v2237_v33 = vpop.xlane.xlu0 %2236 }
 0xaa1   : > { %3337 = vrcp.f32 %v2237_v33 }
 0xaa3   : > { %v2240_v35 = vpop.xlane.xlu1 %2239 }
 0xaa4   : > { %3339 = vrcp.f32 %v2240_v35 }
 0xaa7   : > { %v2246_v0 = vpop.xlane.xlu1 %2245  ;;  %v2243_v2 = vpop.xlane.xlu0 %2242 }
 0xaa8   : > { %3341 = vrcp.f32 %v2243_v2 }
 0xaa9   : > { %v3336_v3 = vpop.eup %3335  ;;  %3343 = vrcp.f32 %v2246_v0 }
 0xaaa   : > { %v2264_v8 = vmul.f32 %v3336_v3, %v3320_v25  ;;  %v2792_v3 = vld [vmem:[%s4371_s5] ss:$0 sm:$0xff] }
 0xaab   : > { %v3338_v5 = vpop.eup %3337  ;;  %v2252_v7 = vpop.xlane.xlu1 %2251 }
 0xaac   : > { %v2265_v16 = vmul.f32 %v3338_v5, %v3322_v46  ;;  %v2249_v18 = vpop.xlane.xlu0 %2248 }
 0xaad   : > { %3345 = vrcp.f32 %v2249_v18 }
 0xaae   : > { %v2272_v20 = vpack.c.bf16 %v2265_v16, %v2264_v8  ;;  %3347 = vrcp.f32 %v2252_v7  ;;  %v3340_v13 = vpop.eup %3339 }
 0xaaf   : > { %v2371_v10 = vpop.permute.xlu1 %2370  ;;  %v2266_v52 = vmul.f32 %v3340_v13, %v3324_v48 }
 0xab0   : > { %v2255_v12 = vpop.xlane.xlu0 %2254  ;;  %3068 = vmatmul.mubr.msk.bf16.vlgmr.msra.gmra.mrb[56].mxu0 %vm664_vm3, %v2272_v20 }
 0xab1   : > { %3349 = vrcp.f32 %v2255_v12  ;;  %3078 = vmatpush3.bf16.msra.mxu0 %v2371_v10  ;;  %3079 = vmatprep.mubr.msk.bf16.mxu0 %vm3566_vm1, %v3565_v14 }
 0xab2   : > { %v3342_v49 = vpop.eup %3341  ;;  %3089 = vmatprep.subr.bf16.mxu0 %v3221_v43 }
 0xab3   : > { %v2418_v51 = vpop.permute.xlu1 %2417  ;;  %v2267_v54 = vmul.f32 %v3342_v49, %v3328_v60  ;;  %v3344_v57 = vpop.eup %3343 }
 0xab4   : > { %v2324_v56 = vpop.permute.xlu0 %2323  ;;  %v2268_v27 = vmul.f32 %v3344_v57, %v4221_v58 }
 0xab5   : > { %3072 = vmatpush3.bf16.msra.mxu1 %v2324_v56  ;;  %v2273_v19 = vpack.c.bf16 %v2267_v54, %v2266_v52 }
 0xab6   : > { %3083 = vmatprep.subr.bf16.mxu1 %v3565_v14 }
 0xab7   : > { %v3346_v24 = vpop.eup %3345  ;;  %v1451_v26 = vpop.permute.xlu1 %1450 }
 0xab8   : > { %v2269_v28 = vmul.f32 %v3346_v24, %v3332_v15  ;;  %1462 = vst.msk [vmem:[#allocation2 + $0x8] sm:$0xff] %vm1460_vm4, %v1451_v26  ;;  %3074 = vmatmul.mubr.msk.bf16.vlgmr.msra.gmra.mrb[64].mxu1 %vm664_vm3, %v2273_v19  ;;  %v1449_v30 = vpop.permute.xlu0 %1448  ;;  %v3348_v31 = vpop.eup %3347 }
 0xab9   : > { %1461 = vst.msk [vmem:[#allocation2] sm:$0xff] %vm1460_vm4, %v1449_v30  ;;  %3084 = vmatpush3.bf16.msra.mxu1 %v2418_v51  ;;  %3085 = vmatprep.mubr.msk.bf16.mxu1 %vm3566_vm1, %v3565_v14  ;;  %v2270_v34 = vmul.f32 %v3348_v31, %v4226_v4 }
 0xaba   : > { %v2274_v37 = vpack.c.bf16 %v2269_v28, %v2268_v27 }
 0xabb   : > { %v3350_v38 = vpop.eup %3349  ;;  %v1963_v39 = vpop.permute.xlu1 %1962 }
 0xabc   : > { %v2271_v41 = vmul.f32 %v3350_v38, %v4231_v22  ;;  %1974 = vst.msk [vmem:[#allocation2 + $0x8] sm:$0xff] %vm1972_vm5, %v1963_v39  ;;  %3080 = vmatmul.mubr.msk.bf16.vlgmr.msra.gmra.mrb[60].mxu0 %vm664_vm3, %v2274_v37  ;;  %v1961_v21 = vpop.permute.xlu0 %1960 }
 0xabd   : > { %1973 = vst.msk [vmem:[#allocation2] sm:$0xff] %vm1972_vm5, %v1961_v21  ;;  %3090 = vmatpush3.bf16.msra.mxu0 %v3221_v43 }
 0xabe   : > { %v2275_v42 = vpack.c.bf16 %v2271_v41, %v2270_v34  ;;  %3091 = vmatprep.subr.bf16.mxu0 %v3222_v47 }
 0xabf   : > { %v1455_v25 = vpop.permute.xlu1 %1454 }
 0xac0   : > { %1464 = vst.msk [vmem:[#allocation2 + $0x18] sm:$0xff] %vm1460_vm4, %v1455_v25  ;;  %3086 = vmatmul.mubr.msk.bf16.vlgmr.msra.gmra.mrb[68].mxu1 %vm664_vm3, %v2275_v42  ;;  %v1453_v14 = vpop.permute.xlu0 %1452 }
 0xac1   : > { %1463 = vst.msk [vmem:[#allocation2 + $0x10] sm:$0xff] %vm1460_vm4, %v1453_v14  ;;  %3092 = vmatpush3.bf16.msra.mxu0 %v3222_v47 }
 0xb83   : > { %v2316_v44 = vpop.f32.mrb[56].mxu0 }
 0xb84   : > { %v3069_v29 = vpop.f32.mrb[57].mxu0 }
 0xb85   : > { %v2319_v46 = vpop.f32.mrb[58].mxu0 }
 0xb86   : > { %v2464_v50 = vpack.c.bf16 %v2319_v46, %v2316_v44  ;;  %v3070_v40 = vpop.f32.mrb[59].mxu0 }
 0xb88   : > { %2472 = vrot.lane.b32.xlu0 %v2464_v50, %s3580_s29 }
 0xb8b   : > { %v2363_v36 = vpop.f32.mrb[64].mxu1 }
 0xb8c   : > { %v3075_v48 = vpop.f32.mrb[65].mxu1  ;;  %1964 = vrot.lane.b32.xlu0 %v1954_v62, %s3579_s15 }
 0xb8d   : > { %v2366_v45 = vpop.f32.mrb[66].mxu1 }
 0xb8e   : > { %v2465_v53 = vpack.c.bf16 %v2366_v45, %v2363_v36  ;;  %v3076_v58 = vpop.f32.mrb[67].mxu1 }
 0xb8f   : > { %v2410_v60 = vpop.f32.mrb[60].mxu0 }
 0xb90   : > { %v3081_v63 = vpop.f32.mrb[61].mxu0  ;;  %2474 = vrot.lane.b32.xlu1 %v2465_v53, %s3580_s29 }
 0xb91   : > { %v2413_v55 = vpop.f32.mrb[62].mxu0 }
 0xb92   : > { %v2466_v4 = vpack.c.bf16 %v2413_v55, %v2410_v60  ;;  %v3082_v15 = vpop.f32.mrb[63].mxu0 }
 0xb93   : > { %v2457_v17 = vpop.f32.mrb[68].mxu1 }
 0xb94   : > { %2476 = vrot.lane.b32.xlu0 %v2466_v4, %s3580_s29  ;;  %1966 = vrot.lane.b32.xlu1 %v1955_v11, %s3579_s15  ;;  %v3087_v9 = vpop.f32.mrb[69].mxu1 }
 0xb95   : > { %v2460_v22 = vpop.f32.mrb[70].mxu1 }
 0xb96   : > { %v2467_v59 = vpack.c.bf16 %v2460_v22, %v2457_v17  ;;  %v3088_v61 = vpop.f32.mrb[71].mxu1 }
 0xb98   : > { %2478 = vrot.lane.b32.xlu1 %v2467_v59, %s3580_s29 }
 0xbfa   : > { %v2473_v62 = vpop.permute.xlu0 %2472 }
 0xbfb   : > { %2485 = vst.msk [vmem:[#allocation2] sm:$0xff] %vm2484_vm6, %v2473_v62 }
 0xbfe   : > { %v1965_v23 = vpop.permute.xlu0 %1964 }
 0xbff   : > { %1975 = vst.msk [vmem:[#allocation2 + $0x10] sm:$0xff] %vm1972_vm5, %v1965_v23 }
 0xc02   : > { %v2475_v32 = vpop.permute.xlu1 %2474  ;;  %v2489_v33 = vld [vmem:[#allocation2] sm:$0xff] }
 0xc03   : > { %2486 = vst.msk [vmem:[#allocation2 + $0x8] sm:$0xff] %vm2484_vm6, %v2475_v32  ;;  %3093 = vmatprep.mubr.msk.bf16.mxu0 %vm379_vm0, %v2489_v33 }
 0xc06   : > { %v1967_v35 = vpop.permute.xlu1 %1966  ;;  %v2477_v0 = vpop.permute.xlu0 %2476 }
 0xc07   : > { %1976 = vst.msk [vmem:[#allocation2 + $0x18] sm:$0xff] %vm1972_vm5, %v1967_v35 }
 0xc08   : > { %2487 = vst.msk [vmem:[#allocation2 + $0x10] sm:$0xff] %vm2484_vm6, %v2477_v0 }
 0xc0a   : > { %v2479_v1 = vpop.permute.xlu1 %2478  ;;  %v2490_v6 = vld [vmem:[#allocation2 + $0x8] sm:$0xff] }
 0xc0b   : > { %2488 = vst.msk [vmem:[#allocation2 + $0x18] sm:$0xff] %vm2484_vm6, %v2479_v1  ;;  %3094 = vmatmul.mubr.msk.bf16.vlgmr.msra.gmra.mrb[64].mxu0 %vm379_vm0, %v2490_v6 }
 0xc0f   : > { %v2491_v11 = vld [vmem:[#allocation2 + $0x10] sm:$0xff] }
 0xc10   : > { %3097 = vmatprep.mubr.msk.bf16.mxu0 %vm379_vm0, %v2491_v11 }
 0xc12   : > { %v2492_v2 = vld [vmem:[#allocation2 + $0x18] sm:$0xff] }
 0xc13   : > { %3098 = vmatmul.mubr.msk.bf16.gmra.mrb[68].mxu0 %vm379_vm0, %v2492_v2 }
 0xcde   : > { %v3095_v5 = vpop.f32.mrb[64].mxu0 }
 0xcdf   : > { %v2571_v7 = vadd.f32 %v3095_v5, %v2792_v3  ;;  %v2562_v8 = vpop.f32.mrb[65].mxu0 }
 0xce0   : > { %v2563_v16 = vadd.f32 %v2792_v3, %v2562_v8  ;;  %v3096_v18 = vpop.f32.mrb[66].mxu0 }
 0xce1   : > { %2595 = vst.msk [vmem:[%s340_s16 + $0x10] sm:$0xff] %vm379_vm0, %v2571_v7  ;;  %v2574_v20 = vadd.f32 %v3096_v18, %v2792_v3  ;;  %v2565_v10 = vpop.f32.mrb[67].mxu0 }
 0xce2   : > { %2593 = vst.msk [vmem:[%s340_s16] sm:$0xff] %vm379_vm0, %v2563_v16  ;;  %v2566_v12 = vadd.f32 %v2792_v3, %v2565_v10 }
 0xce3   : > { %2596 = vst.msk [vmem:[%s340_s16 + $0x18] sm:$0xff] %vm379_vm0, %v2574_v20 }
 0xce4   : > { %2594 = vst.msk [vmem:[%s340_s16 + $0x8] sm:$0xff] %vm379_vm0, %v2566_v12 }
 0xce6   : > { %v3099_v13 = vpop.f32.mrb[68].mxu0 }
 0xce7   : > { %v2587_v49 = vadd.f32 %v3099_v13, %v2792_v3  ;;  %v2578_v51 = vpop.f32.mrb[69].mxu0 }
 0xce8   : > { %v2579_v52 = vadd.f32 %v2792_v3, %v2578_v51  ;;  %v3100_v54 = vpop.f32.mrb[70].mxu0 }
 0xce9   : > { %2599 = vst.msk [vmem:[%s340_s16 + $0x30] sm:$0xff] %vm379_vm0, %v2587_v49  ;;  %v2590_v56 = vadd.f32 %v3100_v54, %v2792_v3  ;;  %v2581_v57 = vpop.f32.mrb[71].mxu0 }
 0xcea   : > { %2597 = vst.msk [vmem:[%s340_s16 + $0x20] sm:$0xff] %vm379_vm0, %v2579_v52  ;;  %v2582_v19 = vadd.f32 %v2792_v3, %v2581_v57 }
 0xceb   : > { %2600 = vst.msk [vmem:[%s340_s16 + $0x38] sm:$0xff] %vm379_vm0, %v2590_v56 }
 0xcec   : > { %2598 = vst.msk [vmem:[%s340_s16 + $0x28] sm:$0xff] %vm379_vm0, %v2582_v19 }
 0xced   : > { %3478 = shalt.err (!%p3475_p0)
}
 0xcee   : > { %s3479_s11 = scalar_lea.hbm %s4311_s12, 1024  ;;  %s3483_s7 = scalar_lea.hbm %s4372_s6, 2048 }
 0xcef   : > { %p3480_p4 = scmp.ne.s32.totalorder %s4311_s12, %s3479_s11  ;;  %p3484_p12 = scmp.lt.u32.totalorder %s4311_s12, %s4372_s6 }
 0xcf0   : > { %p3485_p1 = scmp.lt.u32.totalorder %s3483_s7, %s3479_s11  ;;  %p3487_p13 = scmp.lt.u32.totalorder %s3479_s11, %s4311_s12 }
 0xcf1   : > { %p3481_p2 = pnand %p3480_p4, %p3781_p3 }
 0xcf2   : > { %p3486_p7 = por %p3485_p1, %p3484_p12 }
 0xcf3   : > { %p3482_p8 = pneg %p3481_p2 }
 0xcf4   : > { %p3488_p6 = por %p3487_p13, %p3486_p7 }
 0xcf6   : > { %p3489_p10 = pnand %p3488_p6, %p3482_p8 }
 0xcf8   : > { %3492 = shalt.err (!%p3489_p10)
}
 0xcf9   : > { %s3582_s21 = smov 128  }
 0xcfa   : > { %3119 = dma.vmem_to_hbm [thread:$0]  (%p3781_p3), %s4314_s8, 1024, %s4311_s12, %s2602_s24, %s3582_s21, %s3582_s21, %s3578_s14  }
 0xcfb PF: > { %s4401_s17 = sld [smem:[#allocation16_spill]]  ;;  %s4402_s1 = sld [smem:[#allocation17_spill]] }
 0xcfc   : > { %p4404_p5 = scmp.ge.s32.totalorder %s3555_s26, 2 }
 0xd01   : > { %s2633_s13 = sand.u32 1, %s4401_s17   ;;  %p4403_p11 = scmp.ne.s32.totalorder %s4402_s1, 0 }
 0xd02   : > { %s2634_s19 = scalar_lea.sflag [#allocation5], %s2633_s13 }
 0xd03   : > { %p3136_p9 = pnand %p4404_p5, %p4403_p11 }
 0xd05   : > { %3530 = dma.done.wait (!%p3136_p9), %s2634_s19, 1024  }
 0xd06   : > { %3532 = vsyncadd (!%p3136_p9), %s2634_s19, 4294966272  ;;  %s24_s26 = sadd.s32 1, %s3555_s26   ;;  %s4405_s21 = smov %s3539_s22 }
 0xd07   : > { %p21_p0 = scmp.ge.s32.totalorder %s24_s26, 4   ;;  %s4406_s22 = smov %s3543_s23 }
 0xd08   : > { %s4407_s23 = smov %s3790_s10  ;;  %s4408_s24 = smov %s3551_s25 }
 0xd09   : > { %s4409_s25 = smov %s4411_s20  ;;  %23 = sbr.rel (!%p21_p0) target bundleno = 10 (0xa), region = 105 }
 0xd10   :  { %2639 = vsyncpa [#allocation4], 1 }
 0xd11   :  { %2641 = vsyncpa [#allocation4 + $0x1], 1 }
 0xd12   :  { %2642 = vsyncpa [#allocation7], 1 }
 0xd13   :  { %2643 = vsyncpa [#allocation10], 1 }
 0xd14   :  { %2644 = vsyncpa [#allocation5], 1 }
 0xd15   :  { %2646 = vsyncpa [#allocation5 + $0x1], 1 }

</bundles_post_ra>
